<compile_context>
chip_gen: v6e
topology: v6e:2x2x1
jax: 0.10.0
libtpu: 0.0.40
codegen_flags: <defaults>
</compile_context>

<pallas_src>
import numpy as np
import jax
import jax.numpy as jnp
from jax import lax
from jax.experimental import pallas as pl
from jax.experimental.pallas import tpu as pltpu


def gaussian_kernel1d(ksize, sigma):
    """Replicates cv2.getGaussianKernel (analytic formula; exact for ksize > 7)."""
    if sigma <= 0:
        sigma = 0.3 * ((ksize - 1) * 0.5 - 1) + 0.8
    x = np.arange(ksize, dtype=np.float64) - (ksize - 1) / 2.0
    k = np.exp(-(x * x) / (2.0 * sigma * sigma))
    return (k / k.sum()).astype(np.float32)


def _reflect(i, n):
    """PyTorch F.pad(mode='reflect') index map (single reflection, pad < n)."""
    if i < 0:
        return -i
    if i >= n:
        return 2 * (n - 1) - i
    return i


def _reflect_blur_matrix(n, k1):
    """(n, n) matrix M s.t. x @ M == 1-D Gaussian blur of x's rows w/ reflect pad."""
    k = int(k1.shape[0])
    p = k // 2
    m = np.zeros((n, n), dtype=np.float32)
    for j in range(n):                       # output column
        for t in range(k):                   # tap
            m[_reflect(j - p + t, n), j] += float(k1[t])
    return m


def _pick_row_chunk(h):
    for rc in (256, 128, 64, 32, 16, 8, 4, 2, 1):
        if h % rc == 0:
            return rc
    return h


def _make_usm_call(n, h, w, k, k1, weight, threshold):
    p = k // 2
    hp = h + 2 * p
    coeffs = tuple(float(v) for v in k1)
    thr = float(threshold) / 255.0           # fold *255 into the constant
    wgt = float(weight)
    rc = _pick_row_chunk(h)                  # row-chunk size for bounded vregs
    n_chunks = h // rc
    unroll = n_chunks <= 8                   # give LLO scheduler full visibility

    def kernel(img_ref, mh_ref, out_ref, hb_ref, hm_ref, dl_ref):
        # img_ref: (h, w) plane        mh_ref: (w, w) reflect-blur matrix
        # hb_ref / hm_ref: (h + 2p, w) scratch for the horizontally blurred
        #   image / mask with a vertical reflect halo.
        # dl_ref: (h, w) scratch caching (sharp - img).

        # ---- phase 1: horizontal blur of the image (MXU) -> hb interior ----
        def h_body(ci, carry):
            a = pl.multiple_of(ci * rc, rc)
            chunk = img_ref[pl.ds(a, rc), :]
            hb_ref[pl.ds(a + p, rc), :] = jnp.dot(
                chunk, mh_ref[...],
                preferred_element_type=jnp.float32,
                precision=lax.Precision.HIGHEST)
            return carry
        lax.fori_loop(0, n_chunks, h_body, 0, unroll=unroll)

        # vertical reflect halo for the image (row mirroring inside VMEM)
        for t in range(p):
            hb_ref[pl.ds(p - 1 - t, 1), :] = hb_ref[pl.ds(p + 1 + t, 1), :]
            hb_ref[pl.ds(h + p + t, 1), :] = hb_ref[pl.ds(h + p - 2 - t, 1), :]

        # ---- phase 2: vertical blur, residual, mask, sharp delta, mask blur ----
        def m_body(ci, carry):
            a = pl.multiple_of(ci * rc, rc)
            img_c = img_ref[pl.ds(a, rc), :]
            blur_c = coeffs[0] * hb_ref[pl.ds(a, rc), :]
            for s in range(1, k):            # sublane-shifted VMEM reads
                blur_c = blur_c + coeffs[s] * hb_ref[pl.ds(a + s, rc), :]
            resid = img_c - blur_c
            mask_c = (jnp.abs(resid) > thr).astype(jnp.float32)
            sharp = jnp.clip(img_c + wgt * resid, 0.0, 1.0)
            dl_ref[pl.ds(a, rc), :] = sharp - img_c
            hm_ref[pl.ds(a + p, rc), :] = jnp.dot(
                mask_c, mh_ref[...],
                preferred_element_type=jnp.float32,
                precision=lax.Precision.HIGHEST)
            return carry
        lax.fori_loop(0, n_chunks, m_body, 0, unroll=unroll)

        for t in range(p):
            hm_ref[pl.ds(p - 1 - t, 1), :] = hm_ref[pl.ds(p + 1 + t, 1), :]
            hm_ref[pl.ds(h + p + t, 1), :] = hm_ref[pl.ds(h + p - 2 - t, 1), :]

        # ---- phase 3: soft-mask vertical blur + blend -> output tile ----
        def o_body(ci, carry):
            a = pl.multiple_of(ci * rc, rc)
            soft_c = coeffs[0] * hm_ref[pl.ds(a, rc), :]
            for s in range(1, k):
                soft_c = soft_c + coeffs[s] * hm_ref[pl.ds(a + s, rc), :]
            out_ref[pl.ds(a, rc), :] = (img_ref[pl.ds(a, rc), :]
                                        + soft_c * dl_ref[pl.ds(a, rc), :])
            return carry
        lax.fori_loop(0, n_chunks, o_body, 0, unroll=unroll)

    # VMEM budget: double-buffered input + output planes, blur matrix, scratches.
    plane_b = h * w * 4
    need = (2 * plane_b            # input plane (double-buffered)
            + 2 * plane_b          # output plane (double-buffered)
            + 2 * w * w * 4        # reflect-blur matrix (worst case)
            + 2 * hp * w * 4       # hb + hm haloed scratch
            + plane_b)             # delta scratch
    vmem_limit = int(min(max(need + (4 << 20), 32 << 20), 64 << 20))

    return pl.pallas_call(
        kernel,
        out_shape=jax.ShapeDtypeStruct((n, h, w), jnp.float32),
        grid=(n,),
        in_specs=[pl.BlockSpec((None, h, w), lambda i: (i, 0, 0)),
                  pl.BlockSpec((w, w), lambda i: (0, 0))],   # fetched once
        out_specs=pl.BlockSpec((None, h, w), lambda i: (i, 0, 0)),
        scratch_shapes=[pltpu.VMEM((hp, w), jnp.float32),
                        pltpu.VMEM((hp, w), jnp.float32),
                        pltpu.VMEM((h, w), jnp.float32)],
        compiler_params=pltpu.CompilerParams(
            dimension_semantics=("parallel",),
            vmem_limit_bytes=vmem_limit),
    )


def usm_sharp(img, kernel1d, weight=0.5, threshold=10.0):
    """USMSharp.forward.  img: (b, c, h, w) float32 in [0, 1]."""
    b, c, h, w = img.shape
    k = int(kernel1d.shape[0])
    p = k // 2
    assert k % 2 == 1, "Wrong kernel size"
    assert h > p and w > p, "reflect padding requires pad < spatial dim"
    n = b * c
    planes = img.reshape(n, h, w).astype(jnp.float32)
    mh = jnp.asarray(_reflect_blur_matrix(w, np.asarray(kernel1d)))
    out = _make_usm_call(n, h, w, k, np.asarray(kernel1d, np.float32),
                         float(weight), float(threshold))(planes, mh)
    return out.reshape(b, c, h, w)


def _usm_sharp_ref(img, kernel1d, weight=0.5, threshold=10.0):
    """Pure-JAX reference (XLA conv) of the PyTorch USMSharp forward."""
    b, c, h, w = img.shape
    k = int(kernel1d.shape[0])
    p = k // 2
    k2d = jnp.asarray(np.outer(kernel1d, kernel1d), jnp.float32)[None, None]
    x = img.reshape(b * c, 1, h, w).astype(jnp.float32)

    def f2d(y):
        yp = jnp.pad(y, ((0, 0), (0, 0), (p, p), (p, p)), mode='reflect')
        return lax.conv_general_dilated(
            yp, k2d, (1, 1), 'VALID',
            dimension_numbers=('NCHW', 'OIHW', 'NCHW'),
            precision=lax.Precision.HIGHEST)

    blur = f2d(x)
    residual = x - blur
    mask = (jnp.abs(residual) * 255.0 > threshold).astype(jnp.float32)
    soft = f2d(mask)
    sharp = jnp.clip(x + weight * residual, 0.0, 1.0)
    out = soft * sharp + (1.0 - soft) * x
    return out.reshape(b, c, h, w)


if __name__ == "__main__":
    key = jax.random.PRNGKey(0)
    # w is a multiple of 128 so output stores are lane-dense.
    b, c, h, w = 2, 3, 16, 128
    img = jax.random.uniform(key, (b, c, h, w), dtype=jnp.float32)

    # USMSharp(radius=9, sigma=0): odd radius kept as-is; sigma derived from the
    # kernel size exactly like cv2.getGaussianKernel does for sigma <= 0.
    radius = 9
    k1 = gaussian_kernel1d(radius, 0)

    out = usm_sharp(img, k1, weight=0.5, threshold=10.0)
    out = jax.block_until_ready(out)
    assert out.shape == (b, c, h, w) and out.dtype == jnp.float32
    assert bool(jnp.isfinite(out).all())

    # Self-check vs. a pure-JAX reference.  Tolerances are deliberately robust
    # to rare mask-threshold ties (a tie flips a 0/1 mask pixel and perturbs a
    # small neighborhood of the output).
    ref = _usm_sharp_ref(img, k1, 0.5, 10.0)
    diff = jnp.abs(out - ref)
    assert float(jnp.mean(diff)) < 1e-3
    assert float(jnp.mean((diff < 1e-2).astype(jnp.float32))) > 0.99

    print("KERNEL_OK")
</pallas_src>

<mosaic_0001>
module attributes {stable_mosaic.version = 11 : i64} {
  func.func @kernel(%arg0: i32, %arg1: memref<1x16x128xf32, #tpu.memory_space<vmem>>, %arg2: memref<128x128xf32, #tpu.memory_space<vmem>>, %arg3: memref<1x16x128xf32, #tpu.memory_space<vmem>>, %arg4: memref<24x128xf32, #tpu.memory_space<vmem>>, %arg5: memref<24x128xf32, #tpu.memory_space<vmem>>, %arg6: memref<16x128xf32, #tpu.memory_space<vmem>>) attributes {dimension_semantics = [#tpu.dimension_semantics<parallel>], iteration_bounds = array<i64: 6>, scalar_prefetch = 0 : i64, scratch_operands = 3 : i64, tpu.core_type = #tpu.core_type<tc>, window_params = [{transform_indices = @transform_0, window_bounds = array<i64: 1, 16, 128>}, {pipeline_mode = #tpu.pipeline_mode<synchronous>, transform_indices = @transform_1, window_bounds = array<i64: 128, 128>}, {transform_indices = @transform_2, window_bounds = array<i64: 1, 16, 128>}]} {
    %c0_i32 = arith.constant 0 : i32
    %c16_i32 = arith.constant 16 : i32
    %0 = arith.muli %c0_i32, %c16_i32 : i32
    %1 = tpu.assume_multiple %0, 16 : i32
    %c0 = arith.constant 0 : index
    %2 = arith.index_cast %1 : i32 to index
    %c0_0 = arith.constant 0 : index
    %3 = vector.load %arg1[%c0, %2, %c0_0] : memref<1x16x128xf32, #tpu.memory_space<vmem>>, vector<1x16x128xf32>
    %4 = vector.shape_cast %3 : vector<1x16x128xf32> to vector<16x128xf32>
    %c0_1 = arith.constant 0 : index
    %c0_2 = arith.constant 0 : index
    %5 = vector.load %arg2[%c0_1, %c0_2] : memref<128x128xf32, #tpu.memory_space<vmem>>, vector<128x128xf32>
    %cst = arith.constant dense<0.000000e+00> : vector<16x128xf32>
    %6 = tpu.matmul %4, %5, %cst {dimension_numbers = #tpu.dot_dimension_numbers<[1], [0], [0], [1], [0, 0, 1, 1], [], []>, precision = #tpu.contract_precision<fp32>} : vector<16x128xf32>, vector<128x128xf32>, vector<16x128xf32> -> vector<16x128xf32>
    %c4_i32 = arith.constant 4 : i32
    %7 = arith.addi %1, %c4_i32 : i32
    %8 = arith.index_cast %7 : i32 to index
    %c0_3 = arith.constant 0 : index
    %9 = vector.load %arg4[%8, %c0_3] : memref<24x128xf32, #tpu.memory_space<vmem>>, vector<16x128xf32>
    tpu.vector_store %arg4[%8, %c0_3], %6 {strides = array<i32>} : memref<24x128xf32, #tpu.memory_space<vmem>>, vector<16x128xf32>,
    %c1_i32 = arith.constant 1 : i32
    %c5 = arith.constant 5 : index
    %c0_4 = arith.constant 0 : index
    %10 = vector.load %arg4[%c5, %c0_4] : memref<24x128xf32, #tpu.memory_space<vmem>>, vector<1x128xf32>
    %c3 = arith.constant 3 : index
    %c0_5 = arith.constant 0 : index
    %11 = vector.load %arg4[%c3, %c0_5] : memref<24x128xf32, #tpu.memory_space<vmem>>, vector<1x128xf32>
    tpu.vector_store %arg4[%c3, %c0_5], %10 {strides = array<i32>} : memref<24x128xf32, #tpu.memory_space<vmem>>, vector<1x128xf32>,
    %c18 = arith.constant 18 : index
    %c0_6 = arith.constant 0 : index
    %12 = vector.load %arg4[%c18, %c0_6] : memref<24x128xf32, #tpu.memory_space<vmem>>, vector<1x128xf32>
    %c20 = arith.constant 20 : index
    %c0_7 = arith.constant 0 : index
    %13 = vector.load %arg4[%c20, %c0_7] : memref<24x128xf32, #tpu.memory_space<vmem>>, vector<1x128xf32>
    tpu.vector_store %arg4[%c20, %c0_7], %12 {strides = array<i32>} : memref<24x128xf32, #tpu.memory_space<vmem>>, vector<1x128xf32>,
    %c6 = arith.constant 6 : index
    %c0_8 = arith.constant 0 : index
    %14 = vector.load %arg4[%c6, %c0_8] : memref<24x128xf32, #tpu.memory_space<vmem>>, vector<1x128xf32>
    %c2 = arith.constant 2 : index
    %c0_9 = arith.constant 0 : index
    %15 = vector.load %arg4[%c2, %c0_9] : memref<24x128xf32, #tpu.memory_space<vmem>>, vector<1x128xf32>
    tpu.vector_store %arg4[%c2, %c0_9], %14 {strides = array<i32>} : memref<24x128xf32, #tpu.memory_space<vmem>>, vector<1x128xf32>,
    %c17 = arith.constant 17 : index
    %c0_10 = arith.constant 0 : index
    %16 = vector.load %arg4[%c17, %c0_10] : memref<24x128xf32, #tpu.memory_space<vmem>>, vector<1x128xf32>
    %c21 = arith.constant 21 : index
    %c0_11 = arith.constant 0 : index
    %17 = vector.load %arg4[%c21, %c0_11] : memref<24x128xf32, #tpu.memory_space<vmem>>, vector<1x128xf32>
    tpu.vector_store %arg4[%c21, %c0_11], %16 {strides = array<i32>} : memref<24x128xf32, #tpu.memory_space<vmem>>, vector<1x128xf32>,
    %c7 = arith.constant 7 : index
    %c0_12 = arith.constant 0 : index
    %18 = vector.load %arg4[%c7, %c0_12] : memref<24x128xf32, #tpu.memory_space<vmem>>, vector<1x128xf32>
    %c1 = arith.constant 1 : index
    %c0_13 = arith.constant 0 : index
    %19 = vector.load %arg4[%c1, %c0_13] : memref<24x128xf32, #tpu.memory_space<vmem>>, vector<1x128xf32>
    tpu.vector_store %arg4[%c1, %c0_13], %18 {strides = array<i32>} : memref<24x128xf32, #tpu.memory_space<vmem>>, vector<1x128xf32>,
    %c16 = arith.constant 16 : index
    %c0_14 = arith.constant 0 : index
    %20 = vector.load %arg4[%c16, %c0_14] : memref<24x128xf32, #tpu.memory_space<vmem>>, vector<1x128xf32>
    %c22 = arith.constant 22 : index
    %c0_15 = arith.constant 0 : index
    %21 = vector.load %arg4[%c22, %c0_15] : memref<24x128xf32, #tpu.memory_space<vmem>>, vector<1x128xf32>
    tpu.vector_store %arg4[%c22, %c0_15], %20 {strides = array<i32>} : memref<24x128xf32, #tpu.memory_space<vmem>>, vector<1x128xf32>,
    %c8 = arith.constant 8 : index
    %c0_16 = arith.constant 0 : index
    %22 = vector.load %arg4[%c8, %c0_16] : memref<24x128xf32, #tpu.memory_space<vmem>>, vector<1x128xf32>
    %c0_17 = arith.constant 0 : index
    %c0_18 = arith.constant 0 : index
    %23 = vector.load %arg4[%c0_17, %c0_18] : memref<24x128xf32, #tpu.memory_space<vmem>>, vector<1x128xf32>
    tpu.vector_store %arg4[%c0_17, %c0_18], %22 {strides = array<i32>} : memref<24x128xf32, #tpu.memory_space<vmem>>, vector<1x128xf32>,
    %c15 = arith.constant 15 : index
    %c0_19 = arith.constant 0 : index
    %24 = vector.load %arg4[%c15, %c0_19] : memref<24x128xf32, #tpu.memory_space<vmem>>, vector<1x128xf32>
    %c23 = arith.constant 23 : index
    %c0_20 = arith.constant 0 : index
    %25 = vector.load %arg4[%c23, %c0_20] : memref<24x128xf32, #tpu.memory_space<vmem>>, vector<1x128xf32>
    tpu.vector_store %arg4[%c23, %c0_20], %24 {strides = array<i32>} : memref<24x128xf32, #tpu.memory_space<vmem>>, vector<1x128xf32>,
    %c0_i32_21 = arith.constant 0 : i32
    %c16_i32_22 = arith.constant 16 : i32
    %26 = arith.muli %c0_i32_21, %c16_i32_22 : i32
    %27 = tpu.assume_multiple %26, 16 : i32
    %c0_23 = arith.constant 0 : index
    %28 = arith.index_cast %27 : i32 to index
    %c0_24 = arith.constant 0 : index
    %29 = vector.load %arg1[%c0_23, %28, %c0_24] : memref<1x16x128xf32, #tpu.memory_space<vmem>>, vector<1x16x128xf32>
    %30 = vector.shape_cast %29 : vector<1x16x128xf32> to vector<16x128xf32>
    %31 = arith.index_cast %27 : i32 to index
    %c0_25 = arith.constant 0 : index
    %32 = vector.load %arg4[%31, %c0_25] : memref<24x128xf32, #tpu.memory_space<vmem>>, vector<16x128xf32>
    %cst_26 = arith.constant 0.0148394536 : f32
    %33 = vector.broadcast %cst_26 : f32 to vector<16x128xf32>
    %34 = arith.mulf %33, %32 : vector<16x128xf32>
    %c1_i32_27 = arith.constant 1 : i32
    %35 = arith.addi %27, %c1_i32_27 : i32
    %36 = arith.index_cast %35 : i32 to index
    %c0_28 = arith.constant 0 : index
    %37 = vector.load %arg4[%36, %c0_28] : memref<24x128xf32, #tpu.memory_space<vmem>>, vector<16x128xf32>
    %cst_29 = arith.constant 0.0498172902 : f32
    %38 = vector.broadcast %cst_29 : f32 to vector<16x128xf32>
    %39 = arith.mulf %38, %37 : vector<16x128xf32>
    %40 = arith.addf %34, %39 : vector<16x128xf32>
    %c2_i32 = arith.constant 2 : i32
    %41 = arith.addi %27, %c2_i32 : i32
    %42 = arith.index_cast %41 : i32 to index
    %c0_30 = arith.constant 0 : index
    %43 = vector.load %arg4[%42, %c0_30] : memref<24x128xf32, #tpu.memory_space<vmem>>, vector<16x128xf32>
    %cst_31 = arith.constant 0.118322507 : f32
    %44 = vector.broadcast %cst_31 : f32 to vector<16x128xf32>
    %45 = arith.mulf %44, %43 : vector<16x128xf32>
    %46 = arith.addf %40, %45 : vector<16x128xf32>
    %c3_i32 = arith.constant 3 : i32
    %47 = arith.addi %27, %c3_i32 : i32
    %48 = arith.index_cast %47 : i32 to index
    %c0_32 = arith.constant 0 : index
    %49 = vector.load %arg4[%48, %c0_32] : memref<24x128xf32, #tpu.memory_space<vmem>>, vector<16x128xf32>
    %cst_33 = arith.constant 1.988290e-01 : f32
    %50 = vector.broadcast %cst_33 : f32 to vector<16x128xf32>
    %51 = arith.mulf %50, %49 : vector<16x128xf32>
    %52 = arith.addf %46, %51 : vector<16x128xf32>
    %c4_i32_34 = arith.constant 4 : i32
    %53 = arith.addi %27, %c4_i32_34 : i32
    %54 = arith.index_cast %53 : i32 to index
    %c0_35 = arith.constant 0 : index
    %55 = vector.load %arg4[%54, %c0_35] : memref<24x128xf32, #tpu.memory_space<vmem>>, vector<16x128xf32>
    %cst_36 = arith.constant 0.236383513 : f32
    %56 = vector.broadcast %cst_36 : f32 to vector<16x128xf32>
    %57 = arith.mulf %56, %55 : vector<16x128xf32>
    %58 = arith.addf %52, %57 : vector<16x128xf32>
    %c5_i32 = arith.constant 5 : i32
    %59 = arith.addi %27, %c5_i32 : i32
    %60 = arith.index_cast %59 : i32 to index
    %c0_37 = arith.constant 0 : index
    %61 = vector.load %arg4[%60, %c0_37] : memref<24x128xf32, #tpu.memory_space<vmem>>, vector<16x128xf32>
    %cst_38 = arith.constant 1.988290e-01 : f32
    %62 = vector.broadcast %cst_38 : f32 to vector<16x128xf32>
    %63 = arith.mulf %62, %61 : vector<16x128xf32>
    %64 = arith.addf %58, %63 : vector<16x128xf32>
    %c6_i32 = arith.constant 6 : i32
    %65 = arith.addi %27, %c6_i32 : i32
    %66 = arith.index_cast %65 : i32 to index
    %c0_39 = arith.constant 0 : index
    %67 = vector.load %arg4[%66, %c0_39] : memref<24x128xf32, #tpu.memory_space<vmem>>, vector<16x128xf32>
    %cst_40 = arith.constant 0.118322507 : f32
    %68 = vector.broadcast %cst_40 : f32 to vector<16x128xf32>
    %69 = arith.mulf %68, %67 : vector<16x128xf32>
    %70 = arith.addf %64, %69 : vector<16x128xf32>
    %c7_i32 = arith.constant 7 : i32
    %71 = arith.addi %27, %c7_i32 : i32
    %72 = arith.index_cast %71 : i32 to index
    %c0_41 = arith.constant 0 : index
    %73 = vector.load %arg4[%72, %c0_41] : memref<24x128xf32, #tpu.memory_space<vmem>>, vector<16x128xf32>
    %cst_42 = arith.constant 0.0498172902 : f32
    %74 = vector.broadcast %cst_42 : f32 to vector<16x128xf32>
    %75 = arith.mulf %74, %73 : vector<16x128xf32>
    %76 = arith.addf %70, %75 : vector<16x128xf32>
    %c8_i32 = arith.constant 8 : i32
    %77 = arith.addi %27, %c8_i32 : i32
    %78 = arith.index_cast %77 : i32 to index
    %c0_43 = arith.constant 0 : index
    %79 = vector.load %arg4[%78, %c0_43] : memref<24x128xf32, #tpu.memory_space<vmem>>, vector<16x128xf32>
    %cst_44 = arith.constant 0.0148394536 : f32
    %80 = vector.broadcast %cst_44 : f32 to vector<16x128xf32>
    %81 = arith.mulf %80, %79 : vector<16x128xf32>
    %82 = arith.addf %76, %81 : vector<16x128xf32>
    %83 = arith.subf %30, %82 : vector<16x128xf32>
    %84 = math.absf %83 : vector<16x128xf32>
    %cst_45 = arith.constant 0.0392156877 : f32
    %85 = vector.broadcast %cst_45 : f32 to vector<16x128xf32>
    %86 = arith.cmpf ogt, %84, %85 : vector<16x128xf32>
    %87 = arith.extui %86 : vector<16x128xi1> to vector<16x128xi32>
    %88 = arith.sitofp %87 : vector<16x128xi32> to vector<16x128xf32>
    %cst_46 = arith.constant 5.000000e-01 : f32
    %89 = vector.broadcast %cst_46 : f32 to vector<16x128xf32>
    %90 = arith.mulf %89, %83 : vector<16x128xf32>
    %91 = arith.addf %30, %90 : vector<16x128xf32>
    %cst_47 = arith.constant 0.000000e+00 : f32
    %cst_48 = arith.constant 1.000000e+00 : f32
    %92 = vector.broadcast %cst_47 : f32 to vector<16x128xf32>
    %93 = arith.maximumf %92, %91 : vector<16x128xf32>
    %94 = vector.broadcast %cst_48 : f32 to vector<16x128xf32>
    %95 = arith.minimumf %94, %93 : vector<16x128xf32>
    %96 = arith.subf %95, %30 : vector<16x128xf32>
    %97 = arith.index_cast %27 : i32 to index
    %c0_49 = arith.constant 0 : index
    %98 = vector.load %arg6[%97, %c0_49] : memref<16x128xf32, #tpu.memory_space<vmem>>, vector<16x128xf32>
    tpu.vector_store %arg6[%97, %c0_49], %96 {strides = array<i32>} : memref<16x128xf32, #tpu.memory_space<vmem>>, vector<16x128xf32>,
    %c0_50 = arith.constant 0 : index
    %c0_51 = arith.constant 0 : index
    %99 = vector.load %arg2[%c0_50, %c0_51] : memref<128x128xf32, #tpu.memory_space<vmem>>, vector<128x128xf32>
    %cst_52 = arith.constant dense<0.000000e+00> : vector<16x128xf32>
    %100 = tpu.matmul %88, %99, %cst_52 {dimension_numbers = #tpu.dot_dimension_numbers<[1], [0], [0], [1], [0, 0, 1, 1], [], []>, precision = #tpu.contract_precision<fp32>} : vector<16x128xf32>, vector<128x128xf32>, vector<16x128xf32> -> vector<16x128xf32>
    %c4_i32_53 = arith.constant 4 : i32
    %101 = arith.addi %27, %c4_i32_53 : i32
    %102 = arith.index_cast %101 : i32 to index
    %c0_54 = arith.constant 0 : index
    %103 = vector.load %arg5[%102, %c0_54] : memref<24x128xf32, #tpu.memory_space<vmem>>, vector<16x128xf32>
    tpu.vector_store %arg5[%102, %c0_54], %100 {strides = array<i32>} : memref<24x128xf32, #tpu.memory_space<vmem>>, vector<16x128xf32>,
    %c1_i32_55 = arith.constant 1 : i32
    %c5_56 = arith.constant 5 : index
    %c0_57 = arith.constant 0 : index
    %104 = vector.load %arg5[%c5_56, %c0_57] : memref<24x128xf32, #tpu.memory_space<vmem>>, vector<1x128xf32>
    %c3_58 = arith.constant 3 : index
    %c0_59 = arith.constant 0 : index
    %105 = vector.load %arg5[%c3_58, %c0_59] : memref<24x128xf32, #tpu.memory_space<vmem>>, vector<1x128xf32>
    tpu.vector_store %arg5[%c3_58, %c0_59], %104 {strides = array<i32>} : memref<24x128xf32, #tpu.memory_space<vmem>>, vector<1x128xf32>,
    %c18_60 = arith.constant 18 : index
    %c0_61 = arith.constant 0 : index
    %106 = vector.load %arg5[%c18_60, %c0_61] : memref<24x128xf32, #tpu.memory_space<vmem>>, vector<1x128xf32>
    %c20_62 = arith.constant 20 : index
    %c0_63 = arith.constant 0 : index
    %107 = vector.load %arg5[%c20_62, %c0_63] : memref<24x128xf32, #tpu.memory_space<vmem>>, vector<1x128xf32>
    tpu.vector_store %arg5[%c20_62, %c0_63], %106 {strides = array<i32>} : memref<24x128xf32, #tpu.memory_space<vmem>>, vector<1x128xf32>,
    %c6_64 = arith.constant 6 : index
    %c0_65 = arith.constant 0 : index
    %108 = vector.load %arg5[%c6_64, %c0_65] : memref<24x128xf32, #tpu.memory_space<vmem>>, vector<1x128xf32>
    %c2_66 = arith.constant 2 : index
    %c0_67 = arith.constant 0 : index
    %109 = vector.load %arg5[%c2_66, %c0_67] : memref<24x128xf32, #tpu.memory_space<vmem>>, vector<1x128xf32>
    tpu.vector_store %arg5[%c2_66, %c0_67], %108 {strides = array<i32>} : memref<24x128xf32, #tpu.memory_space<vmem>>, vector<1x128xf32>,
    %c17_68 = arith.constant 17 : index
    %c0_69 = arith.constant 0 : index
    %110 = vector.load %arg5[%c17_68, %c0_69] : memref<24x128xf32, #tpu.memory_space<vmem>>, vector<1x128xf32>
    %c21_70 = arith.constant 21 : index
    %c0_71 = arith.constant 0 : index
    %111 = vector.load %arg5[%c21_70, %c0_71] : memref<24x128xf32, #tpu.memory_space<vmem>>, vector<1x128xf32>
    tpu.vector_store %arg5[%c21_70, %c0_71], %110 {strides = array<i32>} : memref<24x128xf32, #tpu.memory_space<vmem>>, vector<1x128xf32>,
    %c7_72 = arith.constant 7 : index
    %c0_73 = arith.constant 0 : index
    %112 = vector.load %arg5[%c7_72, %c0_73] : memref<24x128xf32, #tpu.memory_space<vmem>>, vector<1x128xf32>
    %c1_74 = arith.constant 1 : index
    %c0_75 = arith.constant 0 : index
    %113 = vector.load %arg5[%c1_74, %c0_75] : memref<24x128xf32, #tpu.memory_space<vmem>>, vector<1x128xf32>
    tpu.vector_store %arg5[%c1_74, %c0_75], %112 {strides = array<i32>} : memref<24x128xf32, #tpu.memory_space<vmem>>, vector<1x128xf32>,
    %c16_76 = arith.constant 16 : index
    %c0_77 = arith.constant 0 : index
    %114 = vector.load %arg5[%c16_76, %c0_77] : memref<24x128xf32, #tpu.memory_space<vmem>>, vector<1x128xf32>
    %c22_78 = arith.constant 22 : index
    %c0_79 = arith.constant 0 : index
    %115 = vector.load %arg5[%c22_78, %c0_79] : memref<24x128xf32, #tpu.memory_space<vmem>>, vector<1x128xf32>
    tpu.vector_store %arg5[%c22_78, %c0_79], %114 {strides = array<i32>} : memref<24x128xf32, #tpu.memory_space<vmem>>, vector<1x128xf32>,
    %c8_80 = arith.constant 8 : index
    %c0_81 = arith.constant 0 : index
    %116 = vector.load %arg5[%c8_80, %c0_81] : memref<24x128xf32, #tpu.memory_space<vmem>>, vector<1x128xf32>
    %c0_82 = arith.constant 0 : index
    %c0_83 = arith.constant 0 : index
    %117 = vector.load %arg5[%c0_82, %c0_83] : memref<24x128xf32, #tpu.memory_space<vmem>>, vector<1x128xf32>
    tpu.vector_store %arg5[%c0_82, %c0_83], %116 {strides = array<i32>} : memref<24x128xf32, #tpu.memory_space<vmem>>, vector<1x128xf32>,
    %c15_84 = arith.constant 15 : index
    %c0_85 = arith.constant 0 : index
    %118 = vector.load %arg5[%c15_84, %c0_85] : memref<24x128xf32, #tpu.memory_space<vmem>>, vector<1x128xf32>
    %c23_86 = arith.constant 23 : index
    %c0_87 = arith.constant 0 : index
    %119 = vector.load %arg5[%c23_86, %c0_87] : memref<24x128xf32, #tpu.memory_space<vmem>>, vector<1x128xf32>
    tpu.vector_store %arg5[%c23_86, %c0_87], %118 {strides = array<i32>} : memref<24x128xf32, #tpu.memory_space<vmem>>, vector<1x128xf32>,
    %c0_i32_88 = arith.constant 0 : i32
    %c16_i32_89 = arith.constant 16 : i32
    %120 = arith.muli %c0_i32_88, %c16_i32_89 : i32
    %121 = tpu.assume_multiple %120, 16 : i32
    %122 = arith.index_cast %121 : i32 to index
    %c0_90 = arith.constant 0 : index
    %123 = vector.load %arg5[%122, %c0_90] : memref<24x128xf32, #tpu.memory_space<vmem>>, vector<16x128xf32>
    %cst_91 = arith.constant 0.0148394536 : f32
    %124 = vector.broadcast %cst_91 : f32 to vector<16x128xf32>
    %125 = arith.mulf %124, %123 : vector<16x128xf32>
    %c1_i32_92 = arith.constant 1 : i32
    %126 = arith.addi %121, %c1_i32_92 : i32
    %127 = arith.index_cast %126 : i32 to index
    %c0_93 = arith.constant 0 : index
    %128 = vector.load %arg5[%127, %c0_93] : memref<24x128xf32, #tpu.memory_space<vmem>>, vector<16x128xf32>
    %cst_94 = arith.constant 0.0498172902 : f32
    %129 = vector.broadcast %cst_94 : f32 to vector<16x128xf32>
    %130 = arith.mulf %129, %128 : vector<16x128xf32>
    %131 = arith.addf %125, %130 : vector<16x128xf32>
    %c2_i32_95 = arith.constant 2 : i32
    %132 = arith.addi %121, %c2_i32_95 : i32
    %133 = arith.index_cast %132 : i32 to index
    %c0_96 = arith.constant 0 : index
    %134 = vector.load %arg5[%133, %c0_96] : memref<24x128xf32, #tpu.memory_space<vmem>>, vector<16x128xf32>
    %cst_97 = arith.constant 0.118322507 : f32
    %135 = vector.broadcast %cst_97 : f32 to vector<16x128xf32>
    %136 = arith.mulf %135, %134 : vector<16x128xf32>
    %137 = arith.addf %131, %136 : vector<16x128xf32>
    %c3_i32_98 = arith.constant 3 : i32
    %138 = arith.addi %121, %c3_i32_98 : i32
    %139 = arith.index_cast %138 : i32 to index
    %c0_99 = arith.constant 0 : index
    %140 = vector.load %arg5[%139, %c0_99] : memref<24x128xf32, #tpu.memory_space<vmem>>, vector<16x128xf32>
    %cst_100 = arith.constant 1.988290e-01 : f32
    %141 = vector.broadcast %cst_100 : f32 to vector<16x128xf32>
    %142 = arith.mulf %141, %140 : vector<16x128xf32>
    %143 = arith.addf %137, %142 : vector<16x128xf32>
    %c4_i32_101 = arith.constant 4 : i32
    %144 = arith.addi %121, %c4_i32_101 : i32
    %145 = arith.index_cast %144 : i32 to index
    %c0_102 = arith.constant 0 : index
    %146 = vector.load %arg5[%145, %c0_102] : memref<24x128xf32, #tpu.memory_space<vmem>>, vector<16x128xf32>
    %cst_103 = arith.constant 0.236383513 : f32
    %147 = vector.broadcast %cst_103 : f32 to vector<16x128xf32>
    %148 = arith.mulf %147, %146 : vector<16x128xf32>
    %149 = arith.addf %143, %148 : vector<16x128xf32>
    %c5_i32_104 = arith.constant 5 : i32
    %150 = arith.addi %121, %c5_i32_104 : i32
    %151 = arith.index_cast %150 : i32 to index
    %c0_105 = arith.constant 0 : index
    %152 = vector.load %arg5[%151, %c0_105] : memref<24x128xf32, #tpu.memory_space<vmem>>, vector<16x128xf32>
    %cst_106 = arith.constant 1.988290e-01 : f32
    %153 = vector.broadcast %cst_106 : f32 to vector<16x128xf32>
    %154 = arith.mulf %153, %152 : vector<16x128xf32>
    %155 = arith.addf %149, %154 : vector<16x128xf32>
    %c6_i32_107 = arith.constant 6 : i32
    %156 = arith.addi %121, %c6_i32_107 : i32
    %157 = arith.index_cast %156 : i32 to index
    %c0_108 = arith.constant 0 : index
    %158 = vector.load %arg5[%157, %c0_108] : memref<24x128xf32, #tpu.memory_space<vmem>>, vector<16x128xf32>
    %cst_109 = arith.constant 0.118322507 : f32
    %159 = vector.broadcast %cst_109 : f32 to vector<16x128xf32>
    %160 = arith.mulf %159, %158 : vector<16x128xf32>
    %161 = arith.addf %155, %160 : vector<16x128xf32>
    %c7_i32_110 = arith.constant 7 : i32
    %162 = arith.addi %121, %c7_i32_110 : i32
    %163 = arith.index_cast %162 : i32 to index
    %c0_111 = arith.constant 0 : index
    %164 = vector.load %arg5[%163, %c0_111] : memref<24x128xf32, #tpu.memory_space<vmem>>, vector<16x128xf32>
    %cst_112 = arith.constant 0.0498172902 : f32
    %165 = vector.broadcast %cst_112 : f32 to vector<16x128xf32>
    %166 = arith.mulf %165, %164 : vector<16x128xf32>
    %167 = arith.addf %161, %166 : vector<16x128xf32>
    %c8_i32_113 = arith.constant 8 : i32
    %168 = arith.addi %121, %c8_i32_113 : i32
    %169 = arith.index_cast %168 : i32 to index
    %c0_114 = arith.constant 0 : index
    %170 = vector.load %arg5[%169, %c0_114] : memref<24x128xf32, #tpu.memory_space<vmem>>, vector<16x128xf32>
    %cst_115 = arith.constant 0.0148394536 : f32
    %171 = vector.broadcast %cst_115 : f32 to vector<16x128xf32>
    %172 = arith.mulf %171, %170 : vector<16x128xf32>
    %173 = arith.addf %167, %172 : vector<16x128xf32>
    %c0_116 = arith.constant 0 : index
    %174 = arith.index_cast %121 : i32 to index
    %c0_117 = arith.constant 0 : index
    %175 = vector.load %arg1[%c0_116, %174, %c0_117] : memref<1x16x128xf32, #tpu.memory_space<vmem>>, vector<1x16x128xf32>
    %176 = vector.shape_cast %175 : vector<1x16x128xf32> to vector<16x128xf32>
    %177 = arith.index_cast %121 : i32 to index
    %c0_118 = arith.constant 0 : index
    %178 = vector.load %arg6[%177, %c0_118] : memref<16x128xf32, #tpu.memory_space<vmem>>, vector<16x128xf32>
    %179 = arith.mulf %173, %178 : vector<16x128xf32>
    %180 = arith.addf %176, %179 : vector<16x128xf32>
    %c0_119 = arith.constant 0 : index
    %181 = arith.index_cast %121 : i32 to index
    %c0_120 = arith.constant 0 : index
    %182 = vector.load %arg3[%c0_119, %181, %c0_120] : memref<1x16x128xf32, #tpu.memory_space<vmem>>, vector<1x16x128xf32>
    %183 = vector.shape_cast %182 : vector<1x16x128xf32> to vector<16x128xf32>
    %184 = vector.shape_cast %180 : vector<16x128xf32> to vector<1x16x128xf32>
    tpu.vector_store %arg3[%c0_119, %181, %c0_120], %184 {strides = array<i32>} : memref<1x16x128xf32, #tpu.memory_space<vmem>>, vector<1x16x128xf32>,
    %c1_i32_121 = arith.constant 1 : i32
    return
  }
  func.func @transform_0(%arg0: i32) -> (i32, i32, i32) {
    %c0_i32 = arith.constant 0 : i32
    %c0_i32_0 = arith.constant 0 : i32
    %c0_i32_1 = arith.constant 0 : i32
    return %arg0, %c0_i32, %c0_i32_0 : i32, i32, i32
  }
  func.func @transform_1(%arg0: i32) -> (i32, i32) {
    %c0_i32 = arith.constant 0 : i32
    %c0_i32_0 = arith.constant 0 : i32
    %c0_i32_1 = arith.constant 0 : i32
    return %c0_i32, %c0_i32_0 : i32, i32
  }
  func.func @transform_2(%arg0: i32) -> (i32, i32, i32) {
    %c0_i32 = arith.constant 0 : i32
    %c0_i32_0 = arith.constant 0 : i32
    %c0_i32_1 = arith.constant 0 : i32
    return %arg0, %c0_i32, %c0_i32_0 : i32, i32, i32
  }
}

</mosaic_0001>

<bundles_post_ra>
// kernel: tpu_custom_call.1
= control target key start
LH: loop header
LB: loop body
LE: loop exit
PB: predicated region body
PF: predicated region fallthrough
CT: control target
= control target key end

     0   :  { %7 = vsyncpa [#allocation6], 0  ;;  %s3621_s0 = inlined_call_operand.hbm [shape: f32[6,16,128], index: 0, kind: input, shape index: {}]   ;;  %s3622_s1 = inlined_call_operand.hbm [shape: f32[128,128], index: 1, kind: input, shape index: {}]   ;;  %s3623_s2 = inlined_call_operand.hbm [shape: f32[6,16,128], index: 2, kind: output, shape index: {}]  }
   0x1   :  { %9 = vsyncpa [#allocation6 + $0x1], 0 }
   0x2   :  { %10 = vsyncpa [#allocation9], 0 }
   0x3   :  { %11 = vsyncpa [#allocation7], 0 }
   0x4   :  { %13 = vsyncpa [#allocation7 + $0x1], 0  ;;  %s2765_s9 = smov 0   ;;  %s2767_s10 = smov 0  }
   0x5   :  { %s2769_s11 = smov 0   ;;  %s2771_s12 = smov 0  }
   0x6 LB: > { %s2786_s13 = sadd.s32 4294967295, %s2739_s12   ;;  %s1890_s14 = sadd.s32 4294967294, %s2739_s12   ;;  %s2739_s12 = sphi %s2771_s12, %s3750_s12   ;;  %s2735_s11 = sphi %s2769_s11, %s3749_s11   ;;  %s2731_s10 = sphi %s2767_s10, %s3748_s10   ;;  %s2727_s9 = sphi %s2765_s9, %s3747_s9  }
   0x7   : > { %p39_p0 = scmp.ne.s32.totalorder %s2731_s10, %s2727_s9  ;;  %p3624_p1 = scmp.eq.s32.totalorder %s2786_s13, 0 }
   0x8   : > { %p90_p3 = scmp.eq.s32.totalorder %s1890_s14, 5  ;;  %p1891_p5 = scmp.ge.s32.totalorder %s2739_s12, 1 }
   0x9   : > { %p2795_p4 = por %p3624_p1, %p39_p0  ;;  %p97_p7 = scmp.lt.s32.totalorder %s2739_s12, 7 }
   0xa   : > { %p2800_p6 = por %p90_p3, %p39_p0  ;;  %s2741_s18 = smov [#allocation8]  }
   0xb   : > { %s3676_s15 = scalar_select %p2795_p4, 1, 0 }
   0xc   : > { %s3677_s16 = scalar_select %p2800_p6, 1, 0 }
   0xd   : > { %p2805_p8 = pnand %p1891_p5, %p97_p7  ;;  %s109_s19 = sshll.u32 %s2741_s18, 4  ;;  %s110_s19 = int_to_ptr.vmem [resolvable:$true] %s109_s19 }
   0xe   : > { %s2818_s21 = sadd.s32 1, %s2739_s12   ;;  %s26_s22 = sadd.s32 1, %s2735_s11 }
   0xf   : > { %s3678_s17 = scalar_select %p2805_p8, 1, 0 }
  0x10   : > { %p2560_p9 = pneg %p2805_p8  ;;  %s23_s23 = ssub.s32 %s2739_s12, %s2818_s21 }
  0x11   : > { %s2628_s24 = scalar_lea.vmem %s110_s19, 2048  ;;  %p2636_p3 = scmp.lt.s32.totalorder %s110_s19, %s110_s19 }
  0x12   : > { %p2813_p10 = pnand %p2560_p9, %p3624_p1  ;;  %p2629_p12 = scmp.ne.s32.totalorder %s110_s19, %s2628_s24 }
  0x13   : > { %p2637_p5 = scmp.lt.s32.totalorder %s2628_s24, %s2628_s24 }
  0x14   : > { %p2619_p11 = pneg %p2813_p10 }
  0x15   : > { %p2638_p7 = por %p2637_p5, %p2636_p3 }
  0x16   : > { %p2631_p13 = pnand %p2629_p12, %p2619_p11 }
  0x18   : > { %p2632_p0 = pneg %p2631_p13 }
  0x1a   : > { %p2639_p2 = pnand %p2638_p7, %p2632_p0 }
  0x1c   : > { %2642 = shalt.err (!%p2639_p2)
}
  0x1d   : > { %s2742_s25 = smov 128   ;;  %s2743_s26 = smov 8  }
  0x1e   : > { %2563 = dma.hbm_to_vmem [thread:$0]  (!%p2813_p10), %s3622_s1, 2048, %s110_s19, [#allocation9], %s2742_s25, %s2742_s25, %s2743_s26  }
  0x1f   : > { %p24_p2 = scmp.eq.s32.totalorder %s23_s23, 0  ;;  %p33_p9 = scmp.ne.s32.totalorder %s2735_s11, %s2731_s10 }
  0x20   : > { %p34_p11 = scmp.eq.s32.totalorder %s2739_s12, 0  ;;  %p2573_p12 = scmp.lt.s32.totalorder %s2739_s12, 6 }
  0x21   : > { %s2838_s29 = scalar_select %p24_p2, %s2735_s11, %s26_s22  }
  0x22   : > { %p35_p13 = por %p34_p11, %p33_p9  ;;  %p3680_p0 = scmp.eq.s32.totalorder %s2786_s13, 5 }
  0x23   : > { %s123_s3 = sand.u32 1, %s2735_s11   ;;  %s1914_s4 = sshll.u32 %s2739_s12, 8 }
  0x24   : > { %p2842_p3 = por %p3680_p0, %p33_p9  ;;  %s1894_s5 = sshll.u32 %s123_s3, 4 }
  0x25   : > { %s2851_s8 = scalar_lea.hbm %s3621_s0, %s1914_s4  ;;  %s127_s14 = scalar_lea.vmem [#allocation5], %s1894_s5 }
  0x26   : > { %s3681_s30 = scalar_select %p2842_p3, 1, 0 }
  0x27   : > { %s134_s18 = sshll.u32 %s127_s14, 4  ;;  %p2853_p10 = pnand %p2573_p12, %p35_p13  ;;  %s2857_s18 = int_to_ptr.vmem [resolvable:$true] %s134_s18 }
  0x28   : > { %s2859_s20 = scalar_lea.sflag [#allocation6], %s123_s3  ;;  %s2643_s22 = scalar_lea.hbm %s2851_s8, 256 }
  0x29   : > { %p2644_p5 = scmp.ne.s32.totalorder %s2851_s8, %s2643_s22  ;;  %p2645_p7 = pneg %p2853_p10 }
  0x2a   : > { %s2648_s27 = scalar_lea.hbm %s3621_s0, 1536  ;;  %p2649_p11 = scmp.lt.s32.totalorder %s2851_s8, %s3621_s0 }
  0x2b   : > { %p2646_p2 = pnand %p2645_p7, %p2644_p5  ;;  %p2650_p12 = scmp.lt.s32.totalorder %s2648_s27, %s2643_s22 }
  0x2d   : > { %p2647_p9 = pneg %p2646_p2  ;;  %p2651_p13 = por %p2650_p12, %p2649_p11 }
  0x2f   : > { %p2652_p0 = pnand %p2651_p13, %p2647_p9 }
  0x31   : > { %2655 = shalt.err (!%p2652_p0)
}
  0x32   : > { %s2656_s3 = scalar_lea.vmem %s2857_s18, 256  ;;  %s2744_s5 = smov [#allocation5]  }
  0x33   : > { %p2657_p1 = scmp.ne.s32.totalorder %s2857_s18, %s2656_s3  ;;  %s2661_s6 = sshll.u32 %s2744_s5, 4  ;;  %s2662_s6 = int_to_ptr.vmem [resolvable:$false] %s2661_s6 }
  0x34   : > { %s2663_s7 = scalar_lea.vmem %s2662_s6, 512  ;;  %p2664_p2 = scmp.lt.s32.totalorder %s2857_s18, %s2662_s6 }
  0x35   : > { %p2659_p6 = pnand %p2657_p1, %p2645_p7  ;;  %p2665_p3 = scmp.lt.s32.totalorder %s2663_s7, %s2656_s3 }
  0x37   : > { %p2660_p5 = pneg %p2659_p6  ;;  %p2666_p4 = por %p2665_p3, %p2664_p2 }
  0x39   : > { %p2667_p8 = pnand %p2666_p4, %p2660_p5 }
  0x3b   : > { %2670 = shalt.err (!%p2667_p8)
}
  0x3c   : > { %2567 = dma.hbm_to_vmem [thread:$0]  (!%p2853_p10), %s2851_s8, 256, %s2857_s18, %s2859_s20, %s2742_s25, %s2742_s25, %s2743_s26  }
  0x3d   : > { %p3683_p1 = scmp.ne.s32.totalorder %s3678_s17, 0 }
  0x3f   : > { %146 = sbr.rel (%p3683_p1) target bundleno = 754 (0x2f2), region = 28 }
  0x44   : > { %s2886_s14 = sand.u32 1, %s2731_s10   ;;  %p3684_p4 = scmp.ne.s32.totalorder %s3676_s15, 0 }
  0x45   : > { %s1898_s22 = sshll.u32 %s2886_s14, 4  ;;  %s149_s23 = scalar_lea.sflag [#allocation6], %s2886_s14 }
  0x46   : > { %s2892_s19 = scalar_lea.vmem [#allocation5], %s1898_s22 }
  0x47   : > { %2714 = dma.done.wait (%p3684_p4), %s149_s23, 256  }
  0x48   : > { %2716 = vsyncadd (%p3684_p4), %s149_s23, 4294967040  ;;  %p3685_p6 = scmp.eq.s32.totalorder %s2786_s13, 0 }
  0x4a   : > { %2718 = dma.done.wait (%p3685_p6), [#allocation9], 2048   ;;  %p3686_p8 = pmov %p3685_p6 }
  0x4b   : > { %v194_v0 = vld [vmem:[#allocation8 + $0x78] sm:$0xff]  ;;  %v193_v1 = vld [vmem:[#allocation8 + $0x70] sm:$0xff]  ;;  %v192_v2 = vld [vmem:[#allocation8 + $0x68] sm:$0xff]  ;;  %s176_s15 = scalar_lea.vmem [#allocation10], %s1898_s22  ;;  %s1915_s17 = sshll.u32 %s2786_s13, 8 }
  0x4c   : > { %2720 = vsyncadd (%p3686_p8), [#allocation9], 4294965248  ;;  %v2902_v3 = vand.u32 4294901760, %v194_v0  ;;  %v2904_v4 = vand.u32 4294901760, %v193_v1  ;;  %v2906_v5 = vand.u32 4294901760, %v192_v2  ;;  %v191_v6 = vld [vmem:[#allocation8 + $0x60] sm:$0xff]  ;;  %s3577_s18 = scalar_lea.hbm %s3623_s2, %s1915_s17 }
  0x4d   : > { %v190_v7 = vld [vmem:[#allocation8 + $0x58] sm:$0xff]  ;;  %v189_v8 = vld [vmem:[#allocation8 + $0x50] sm:$0xff]  ;;  %v2908_v9 = vand.u32 4294901760, %v191_v6  ;;  %v188_v12 = vld [vmem:[#allocation8 + $0x48] sm:$0xff]  ;;  %s1791_s25 = sshll.u32 %s176_s15, 4  ;;  %s1778_s20 = scalar_lea.sflag [#allocation7], %s2886_s14  ;;  %s3579_s25 = int_to_ptr.vmem [resolvable:$true] %s1791_s25 }
  0x4e   : > { %v2910_v10 = vand.u32 4294901760, %v190_v7  ;;  %v2912_v11 = vand.u32 4294901760, %v189_v8  ;;  %v187_v13 = vld [vmem:[#allocation8 + $0x40] sm:$0xff]  ;;  %2132 = vmatprep.subr.mxu0 %v2902_v3  ;;  %v2916_v14 = vsub.f32 %v194_v0, %v2902_v3  ;;  %v2919_v15 = vsub.f32 %v193_v1, %v2904_v4  ;;  %v186_v18 = vld [vmem:[#allocation8 + $0x38] sm:$0xff]  ;;  %v185_v25 = vld [vmem:[#allocation8 + $0x30] sm:$0xff]  ;;  %s2671_s24 = scalar_lea.vmem %s3579_s25, 256 }
  0x4f   : > { %v2921_v16 = vand.u32 4294901760, %v188_v12  ;;  %v2924_v17 = vsub.f32 %v192_v2, %v2906_v5  ;;  %2133 = vmatpush3.msra.mxu0 %v2902_v3  ;;  %v2928_v19 = vsub.f32 %v191_v6, %v2908_v9  ;;  %v2943_v24 = vand.u32 4294901760, %v187_v13  ;;  %v184_v35 = vld [vmem:[#allocation8 + $0x28] sm:$0xff]  ;;  %v183_v40 = vld [vmem:[#allocation8 + $0x20] sm:$0xff]  ;;  %v182_v48 = vld [vmem:[#allocation8 + $0x18] sm:$0xff]  ;;  %p2672_p3 = scmp.ne.s32.totalorder %s3579_s25, %s2671_s24  ;;  %p3745_p10 = scmp.ne.s32.totalorder %s3681_s30, 0 }
  0x50   : > { %v2931_v20 = vsub.f32 %v190_v7, %v2910_v10  ;;  %2134 = vmatprep.subr.mxu0 %v2904_v4  ;;  %v2935_v21 = vand.u32 4294901760, %v2916_v14  ;;  %v2938_v22 = vand.u32 4294901760, %v2919_v15  ;;  %v2949_v27 = vand.u32 4294901760, %v186_v18  ;;  %v3003_v49 = vld [vmem:[%s2892_s19] sm:$0xff]  ;;  %v3018_v54 = vld [vmem:[%s2892_s19 + $0x8] sm:$0xff]  ;;  %s2747_s13 = smov [#allocation10]  }
  0x51   : > { %v2941_v23 = vand.u32 4294901760, %v2924_v17  ;;  %2135 = vmatpush3.msra.mxu0 %v2904_v4  ;;  %v2947_v26 = vand.u32 4294901760, %v2928_v19  ;;  %v2955_v29 = vsub.f32 %v189_v8, %v2912_v11  ;;  %v2965_v33 = vsub.f32 %v188_v12, %v2921_v16  ;;  %3694 = vst [vmem:[#allocation21_spill] sm:$0xff] %v3003_v49  ;;  %3697 = vst [vmem:[#allocation24_spill] sm:$0xff] %v3018_v54  ;;  %v181_v59 = vld [vmem:[#allocation8 + $0x10] sm:$0xff]  ;;  %v180_v2 = vld [vmem:[#allocation8 + $0x8] sm:$0xff]  ;;  %p2673_p7 = pnand %p2672_p3, %p3745_p10 }
  0x52   : > { %v2952_v28 = vand.u32 4294901760, %v2931_v20  ;;  %2136 = vmatprep.subr.mxu0 %v2906_v5  ;;  %v300_v30 = vsub.f32 %v2916_v14, %v2935_v21  ;;  %v307_v31 = vsub.f32 %v2919_v15, %v2938_v22  ;;  %v2968_v34 = vand.u32 4294901760, %v185_v25  ;;  %s2675_s27 = sshll.u32 %s2747_s13, 4  ;;  %s2676_s27 = int_to_ptr.vmem [resolvable:$false] %s2675_s27 }
  0x53   : > { %3687 = vst [vmem:[#allocation14_spill] sm:$0xff] %v2941_v23  ;;  %3688 = vst [vmem:[#allocation15_spill] sm:$0xff] %v2947_v26  ;;  %v314_v32 = vsub.f32 %v2924_v17, %v2941_v23  ;;  %2137 = vmatpush3.msra.mxu0 %v2906_v5  ;;  %v321_v38 = vsub.f32 %v2928_v19, %v2947_v26  ;;  %v2978_v39 = vand.u32 4294901760, %v2955_v29  ;;  %v2984_v42 = vand.u32 4294901760, %v2965_v33  ;;  %p2674_p9 = pneg %p2673_p7  ;;  %s2677_s28 = scalar_lea.vmem %s2676_s27, 512 }
  0x54   : > { %3689 = vst [vmem:[#allocation16_spill] sm:$0xff] %v2952_v28  ;;  %2138 = vmatprep.subr.mxu0 %v2908_v9  ;;  %v2971_v36 = vand.u32 4294901760, %v300_v30  ;;  %v2973_v37 = vand.u32 4294901760, %v307_v31  ;;  %v328_v41 = vsub.f32 %v2931_v20, %v2952_v28  ;;  %v2987_v43 = vsub.f32 %v187_v13, %v2943_v24  ;;  %p2678_p11 = scmp.lt.s32.totalorder %s3579_s25, %s2676_s27  ;;  %p2679_p12 = scmp.lt.s32.totalorder %s2677_s28, %s2671_s24 }
  0x55   : > { %3691 = vst [vmem:[#allocation18_spill] sm:$0xff] %v2978_v39  ;;  %2139 = vmatpush3.msra.mxu0 %v2908_v9  ;;  %3692 = vst [vmem:[#allocation19_spill] sm:$0xff] %v2984_v42  ;;  %v2991_v44 = vand.u32 4294901760, %v314_v32  ;;  %v2993_v45 = vand.u32 4294901760, %v184_v35  ;;  %v2996_v46 = vsub.f32 %v186_v18, %v2949_v27  ;;  %v3000_v47 = vand.u32 4294901760, %v183_v40  ;;  %v179_v18 = vld [vmem:[#allocation8] sm:$0xff] }
  0x56   : > { %3690 = vst [vmem:[#allocation17_spill] sm:$0xff] %v2973_v37  ;;  %2140 = vmatprep.subr.mxu0 %v2910_v10  ;;  %2167 = vmatprep.subr.mxu1 %v2971_v36  ;;  %v3007_v50 = vand.u32 4294901760, %v321_v38  ;;  %v335_v51 = vsub.f32 %v2955_v29, %v2978_v39  ;;  %v3012_v52 = vand.u32 4294901760, %v2987_v43  ;;  %v3015_v53 = vsub.f32 %v185_v25, %v2968_v34  ;;  %p2680_p13 = por %p2679_p12, %p2678_p11 }
  0x57   : > { %3693 = vst [vmem:[#allocation20_spill] sm:$0xff] %v2991_v44  ;;  %2141 = vmatpush3.msra.mxu0 %v2910_v10  ;;  %2168 = vmatpush3.msra.mxu1 %v2971_v36  ;;  %v3022_v55 = vand.u32 4294901760, %v328_v41  ;;  %v342_v56 = vsub.f32 %v2965_v33, %v2984_v42  ;;  %v3028_v57 = vand.u32 4294901760, %v182_v48  ;;  %v3031_v58 = vand.u32 4294901760, %v2996_v46 }
  0x58   : > { %2142 = vmatprep.subr.mxu0 %v2912_v11  ;;  %2169 = vmatprep.subr.mxu1 %v2973_v37  ;;  %3695 = vst [vmem:[#allocation22_spill] sm:$0xff] %v3007_v50  ;;  %3696 = vst [vmem:[#allocation23_spill] sm:$0xff] %v3012_v52  ;;  %v3034_v60 = vsub.f32 %v184_v35, %v2993_v45  ;;  %v3037_v61 = vand.u32 4294901760, %v3003_v49  ;;  %v3042_v62 = vand.u32 4294901760, %v3018_v54  ;;  %v3046_v63 = vand.u32 4294901760, %v335_v51  ;;  %p2681_p0 = pnand %p2680_p13, %p2674_p9 }
  0x59   : > { %2143 = vmatpush3.msra.mxu0 %v2912_v11  ;;  %2170 = vmatpush3.msra.mxu1 %v2973_v37  ;;  %3698 = vst [vmem:[#allocation25_spill] sm:$0xff] %v3022_v55  ;;  %3699 = vst [vmem:[#allocation26_spill] sm:$0xff] %v3031_v58  ;;  %v349_v0 = vsub.f32 %v2987_v43, %v3012_v52  ;;  %v3051_v1 = vand.u32 4294901760, %v3015_v53  ;;  %v3054_v6 = vsub.f32 %v183_v40, %v3000_v47 }
  0x5a   : > { %2144 = vmatprep.subr.mxu0 %v2921_v16  ;;  %2171 = vmatprep.subr.mxu1 %v2991_v44  ;;  %3700 = vst [vmem:[#allocation27_spill] sm:$0xff] %v3046_v63  ;;  %v3058_v7 = vand.u32 4294901760, %v342_v56  ;;  %v3060_v8 = vand.u32 4294901760, %v181_v59  ;;  %v356_v12 = vsub.f32 %v2996_v46, %v3031_v58  ;;  %v3067_v13 = vand.u32 4294901760, %v3034_v60 }
  0x5b   : > { %2145 = vmatpush3.msra.mxu0 %v2921_v16  ;;  %2172 = vmatpush3.msra.mxu1 %v2991_v44  ;;  %3701 = vst [vmem:[#allocation28_spill] sm:$0xff] %v3051_v1  ;;  %v3071_v25 = vsub.f32 %v3003_v49, %v3037_v61  ;;  %v3074_v30 = vsub.f32 %v182_v48, %v3028_v57  ;;  %v3078_v31 = vand.u32 4294901760, %v180_v2  ;;  %v3086_v35 = vand.u32 4294901760, %v349_v0 }
  0x5c   : > { %2146 = vmatprep.subr.mxu0 %v2943_v24  ;;  %2173 = vmatprep.subr.mxu1 %v3007_v50  ;;  %3702 = vst [vmem:[#allocation29_spill] sm:$0xff] %v3058_v7  ;;  %3703 = vst [vmem:[#allocation30_spill] sm:$0xff] %v3067_v13  ;;  %v3082_v32 = vsub.f32 %v3018_v54, %v3042_v62  ;;  %v363_v38 = vsub.f32 %v3015_v53, %v3051_v1  ;;  %v3091_v40 = vand.u32 4294901760, %v3054_v6 }
  0x5d   : > { %2147 = vmatpush3.msra.mxu0 %v2943_v24  ;;  %2174 = vmatpush3.msra.mxu1 %v3007_v50  ;;  %3704 = vst [vmem:[#allocation31_spill] sm:$0xff] %v3086_v35  ;;  %v3095_v41 = vand.u32 4294901760, %v179_v18  ;;  %v3098_v48 = vsub.f32 %v181_v59, %v3060_v8  ;;  %v3102_v51 = vand.u32 4294901760, %v356_v12  ;;  %v370_v56 = vsub.f32 %v3034_v60, %v3067_v13 }
  0x5e   : > { %2148 = vmatprep.subr.mxu0 %v2949_v27  ;;  %2175 = vmatprep.subr.mxu1 %v3022_v55  ;;  %3705 = vst [vmem:[#allocation32_spill] sm:$0xff] %v3091_v40  ;;  %v3108_v49 = vand.u32 4294901760, %v3074_v30  ;;  %v3114_v54 = vsub.f32 %v180_v2, %v3078_v31  ;;  %v3118_v12 = vand.u32 4294901760, %v363_v38  ;;  %v377_v0 = vsub.f32 %v3054_v6, %v3091_v40 }
  0x5f   : > { %2149 = vmatpush3.msra.mxu0 %v2949_v27  ;;  %2176 = vmatpush3.msra.mxu1 %v3022_v55  ;;  %3706 = vst [vmem:[#allocation33_spill] sm:$0xff] %v3102_v51  ;;  %v3128_v59 = vsub.f32 %v179_v18, %v3095_v41  ;;  %v3132_v2 = vand.u32 4294901760, %v370_v56  ;;  %v3710_v38 = vand.u32 4294901760, %v3071_v25  ;;  %v3711_v18 = vand.u32 4294901760, %v3082_v32 }
  0x60   : > { %2150 = vmatprep.subr.mxu0 %v2968_v34  ;;  %2177 = vmatprep.subr.mxu1 %v3046_v63  ;;  %3707 = vst [vmem:[#allocation34_spill] sm:$0xff] %v3108_v49  ;;  %3708 = vst [vmem:[#allocation35_spill] sm:$0xff] %v3118_v12  ;;  %v384_v55 = vsub.f32 %v3074_v30, %v3108_v49  ;;  %v3145_v50 = vand.u32 4294901760, %v3114_v54  ;;  %v3149_v56 = vand.u32 4294901760, %v377_v0 }
  0x61   : > { %2151 = vmatpush3.msra.mxu0 %v2968_v34  ;;  %2178 = vmatpush3.msra.mxu1 %v3046_v63  ;;  %v279_v63 = vsub.f32 %v3071_v25, %v3710_v38 }
  0x62   : > { %2152 = vmatprep.subr.mxu0 %v2993_v45  ;;  %2179 = vmatprep.subr.mxu1 %v3058_v7  ;;  %3712 = vst [vmem:[#allocation37_spill] sm:$0xff] %v3145_v50  ;;  %v3160_v44 = vand.u32 4294901760, %v384_v55 }
  0x63   : > { %2153 = vmatpush3.msra.mxu0 %v2993_v45  ;;  %2180 = vmatpush3.msra.mxu1 %v3058_v7  ;;  %v3125_v7 = vand.u32 4294901760, %v3098_v48 }
  0x64   : > { %2154 = vmatprep.subr.mxu0 %v3000_v47  ;;  %2181 = vmatprep.subr.mxu1 %v3086_v35 }
  0x65   : > { %2155 = vmatpush3.msra.mxu0 %v3000_v47  ;;  %2182 = vmatpush3.msra.mxu1 %v3086_v35  ;;  %3709 = vst [vmem:[#allocation36_spill] sm:$0xff] %v3125_v7  ;;  %v289_v35 = vsub.f32 %v3082_v32, %v3711_v18  ;;  %v391_v38 = vsub.f32 %v3098_v48, %v3125_v7  ;;  %v280_v18 = vand.u32 4294901760, %v279_v63 }
  0x66   : > { %2156 = vmatprep.subr.mxu0 %v3028_v57  ;;  %2183 = vmatprep.subr.mxu1 %v3102_v51 }
  0x67   : > { %2157 = vmatpush3.msra.mxu0 %v3028_v57  ;;  %2184 = vmatpush3.msra.mxu1 %v3102_v51  ;;  %v3156_v51 = vand.u32 4294901760, %v3128_v59  ;;  %v290_v0 = vand.u32 4294901760, %v289_v35  ;;  %v3170_v37 = vand.u32 4294901760, %v391_v38  ;;  %v3715_v38 = vand.u32 4294901760, %v3082_v32 }
  0x68   : > { %2158 = vmatprep.subr.mxu0 %v3060_v8  ;;  %2185 = vmatprep.subr.mxu1 %v3118_v12 }
  0x69   : > { %2159 = vmatpush3.msra.mxu0 %v3060_v8  ;;  %2186 = vmatpush3.msra.mxu1 %v3118_v12  ;;  %3713 = vst [vmem:[#allocation38_spill] sm:$0xff] %v3156_v51  ;;  %v398_v12 = vsub.f32 %v3114_v54, %v3145_v50  ;;  %v405_v55 = vsub.f32 %v3128_v59, %v3156_v51 }
  0x6a   : > { %2160 = vmatprep.subr.mxu0 %v3078_v31  ;;  %2187 = vmatprep.subr.mxu1 %v3132_v2 }
  0x6b   : > { %2161 = vmatpush3.msra.mxu0 %v3078_v31  ;;  %2188 = vmatpush3.msra.mxu1 %v3132_v2  ;;  %v3176_v63 = vand.u32 4294901760, %v398_v12  ;;  %v3182_v35 = vand.u32 4294901760, %v405_v55  ;;  %v3714_v12 = vand.u32 4294901760, %v3071_v25  ;;  %v3723_v55 = vld [vmem:[#allocation33_spill] sm:$0xff] }
  0x6c   : > { %2162 = vmatprep.subr.mxu0 %v3095_v41  ;;  %2189 = vmatprep.subr.mxu1 %v3149_v56 }
  0x6d   : > { %2163 = vmatpush3.msra.mxu0 %v3095_v41  ;;  %2190 = vmatpush3.msra.mxu1 %v3149_v56 }
  0x6e   : > { %2164 = vmatprep.mubr.f32.mxu0 %v280_v18  ;;  %2191 = vmatprep.subr.mxu1 %v3160_v44  ;;  %v3721_v18 = vld [vmem:[#allocation29_spill] sm:$0xff] }
  0x6f   : > { %2202 = vmatprep.subr.mxu0 %v2916_v14  ;;  %2165 = vmatmul.mubr.f32.vlgmr.msra.gmra.mxu0 %v290_v0  ;;  %v3722_v0 = vld [vmem:[#allocation31_spill] sm:$0xff] }
  0x70   : > { %2192 = vmatpush3.msra.mxu1 %v3160_v44  ;;  %2203 = vmatpush3.msra.mxu0 %v2916_v14 }
  0x71   : > { %2193 = vmatprep.subr.mxu1 %v3170_v37  ;;  %2204 = vmatprep.subr.mxu0 %v2919_v15 }
  0x72   : > { %2194 = vmatpush3.msra.mxu1 %v3170_v37  ;;  %2205 = vmatpush3.msra.mxu0 %v2919_v15 }
  0x73   : > { %2195 = vmatprep.subr.mxu1 %v3176_v63  ;;  %2206 = vmatprep.subr.mxu0 %v2924_v17 }
  0x74   : > { %2196 = vmatpush3.msra.mxu1 %v3176_v63  ;;  %2207 = vmatpush3.msra.mxu0 %v2924_v17 }
  0x75   : > { %2197 = vmatprep.subr.mxu1 %v3182_v35  ;;  %2208 = vmatprep.subr.mxu0 %v2928_v19 }
  0x76   : > { %2198 = vmatpush3.msra.mxu1 %v3182_v35  ;;  %2199 = vmatprep.mubr.f32.mxu1 %v3037_v61 }
  0x77   : > { %2209 = vmatpush3.msra.mxu0 %v2928_v19  ;;  %2200 = vmatmul.mubr.f32.vlgmr.msra.gmra.mxu1 %v3042_v62 }
  0x78   : > { %2210 = vmatprep.subr.mxu0 %v2931_v20  ;;  %2237 = vmatprep.subr.mxu1 %v2902_v3 }
  0x79   : > { %2211 = vmatpush3.msra.mxu0 %v2931_v20  ;;  %2238 = vmatpush3.msra.mxu1 %v2902_v3 }
  0x7a   : > { %2212 = vmatprep.subr.mxu0 %v2955_v29  ;;  %2239 = vmatprep.subr.mxu1 %v2904_v4 }
  0x7b   : > { %2213 = vmatpush3.msra.mxu0 %v2955_v29  ;;  %2240 = vmatpush3.msra.mxu1 %v2904_v4 }
  0x7c   : > { %2214 = vmatprep.subr.mxu0 %v2965_v33  ;;  %2241 = vmatprep.subr.mxu1 %v2906_v5 }
  0x7d   : > { %2215 = vmatpush3.msra.mxu0 %v2965_v33  ;;  %2242 = vmatpush3.msra.mxu1 %v2906_v5 }
  0x7e   : > { %2216 = vmatprep.subr.mxu0 %v2987_v43  ;;  %2243 = vmatprep.subr.mxu1 %v2908_v9 }
  0x7f   : > { %2217 = vmatpush3.msra.mxu0 %v2987_v43  ;;  %2244 = vmatpush3.msra.mxu1 %v2908_v9 }
  0x80   : > { %2218 = vmatprep.subr.mxu0 %v2996_v46  ;;  %2245 = vmatprep.subr.mxu1 %v2910_v10 }
  0x81   : > { %2219 = vmatpush3.msra.mxu0 %v2996_v46  ;;  %2246 = vmatpush3.msra.mxu1 %v2910_v10 }
  0x82   : > { %2220 = vmatprep.subr.mxu0 %v3015_v53  ;;  %2247 = vmatprep.subr.mxu1 %v2912_v11 }
  0x83   : > { %2221 = vmatpush3.msra.mxu0 %v3015_v53  ;;  %2248 = vmatpush3.msra.mxu1 %v2912_v11 }
  0x84   : > { %2222 = vmatprep.subr.mxu0 %v3034_v60  ;;  %2249 = vmatprep.subr.mxu1 %v2921_v16 }
  0x85   : > { %2223 = vmatpush3.msra.mxu0 %v3034_v60  ;;  %2250 = vmatpush3.msra.mxu1 %v2921_v16 }
  0x86   : > { %2224 = vmatprep.subr.mxu0 %v3054_v6  ;;  %2251 = vmatprep.subr.mxu1 %v2943_v24 }
  0x87   : > { %2225 = vmatpush3.msra.mxu0 %v3054_v6  ;;  %2252 = vmatpush3.msra.mxu1 %v2943_v24 }
  0x88   : > { %2226 = vmatprep.subr.mxu0 %v3074_v30  ;;  %2253 = vmatprep.subr.mxu1 %v2949_v27 }
  0x89   : > { %2227 = vmatpush3.msra.mxu0 %v3074_v30  ;;  %2254 = vmatpush3.msra.mxu1 %v2949_v27 }
  0x8a   : > { %2228 = vmatprep.subr.mxu0 %v3098_v48  ;;  %2255 = vmatprep.subr.mxu1 %v2968_v34 }
  0x8b   : > { %2229 = vmatpush3.msra.mxu0 %v3098_v48  ;;  %2256 = vmatpush3.msra.mxu1 %v2968_v34 }
  0x8c   : > { %2230 = vmatprep.subr.mxu0 %v3114_v54  ;;  %2257 = vmatprep.subr.mxu1 %v2993_v45 }
  0x8d   : > { %2231 = vmatpush3.msra.mxu0 %v3114_v54  ;;  %2258 = vmatpush3.msra.mxu1 %v2993_v45 }
  0x8e   : > { %2232 = vmatprep.subr.mxu0 %v3128_v59  ;;  %2259 = vmatprep.subr.mxu1 %v3000_v47 }
  0x8f   : > { %2233 = vmatpush3.msra.mxu0 %v3128_v59  ;;  %2234 = vmatprep.mubr.f32.mxu0 %v3071_v25  ;;  %v3717_v25 = vld [vmem:[#allocation20_spill] sm:$0xff] }
  0x90   : > { %2260 = vmatpush3.msra.mxu1 %v3000_v47  ;;  %2235 = vmatmul.mubr.f32.vlgmr.msra.gmra.mxu0 %v3082_v32  ;;  %v3720_v32 = vld [vmem:[#allocation27_spill] sm:$0xff] }
  0x91   : > { %2261 = vmatprep.subr.mxu1 %v3028_v57  ;;  %2272 = vmatprep.subr.mxu0 %v2935_v21 }
  0x92   : > { %2262 = vmatpush3.msra.mxu1 %v3028_v57  ;;  %2273 = vmatpush3.msra.mxu0 %v2935_v21 }
  0x93   : > { %2263 = vmatprep.subr.mxu1 %v3060_v8  ;;  %2274 = vmatprep.subr.mxu0 %v2938_v22 }
  0x94   : > { %2264 = vmatpush3.msra.mxu1 %v3060_v8  ;;  %2275 = vmatpush3.msra.mxu0 %v2938_v22 }
  0x95   : > { %2265 = vmatprep.subr.mxu1 %v3078_v31  ;;  %2276 = vmatprep.subr.mxu0 %v2941_v23 }
  0x96   : > { %2266 = vmatpush3.msra.mxu1 %v3078_v31  ;;  %2277 = vmatpush3.msra.mxu0 %v2941_v23 }
  0x97   : > { %2267 = vmatprep.subr.mxu1 %v3095_v41  ;;  %2278 = vmatprep.subr.mxu0 %v2947_v26 }
  0x98   : > { %2268 = vmatpush3.msra.mxu1 %v3095_v41  ;;  %2269 = vmatprep.mubr.f32.mxu1 %v3714_v12  ;;  %v3724_v12 = vld [vmem:[#allocation35_spill] sm:$0xff] }
  0x99   : > { %2279 = vmatpush3.msra.mxu0 %v2947_v26  ;;  %2270 = vmatmul.mubr.f32.vlgmr.msra.gmra.mxu1 %v3715_v38 }
  0x9a   : > { %2280 = vmatprep.subr.mxu0 %v2952_v28  ;;  %2307 = vmatprep.subr.mxu1 %v2902_v3 }
  0x9b   : > { %2281 = vmatpush3.msra.mxu0 %v2952_v28  ;;  %2308 = vmatpush3.msra.mxu1 %v2902_v3 }
  0x9c   : > { %2282 = vmatprep.subr.mxu0 %v2978_v39  ;;  %2309 = vmatprep.subr.mxu1 %v2904_v4 }
  0x9d   : > { %2283 = vmatpush3.msra.mxu0 %v2978_v39  ;;  %2310 = vmatpush3.msra.mxu1 %v2904_v4 }
  0x9e   : > { %2284 = vmatprep.subr.mxu0 %v2984_v42  ;;  %2311 = vmatprep.subr.mxu1 %v2906_v5 }
  0x9f   : > { %2285 = vmatpush3.msra.mxu0 %v2984_v42  ;;  %2312 = vmatpush3.msra.mxu1 %v2906_v5 }
  0xa0   : > { %2286 = vmatprep.subr.mxu0 %v3012_v52  ;;  %2313 = vmatprep.subr.mxu1 %v2908_v9 }
  0xa1   : > { %2287 = vmatpush3.msra.mxu0 %v3012_v52  ;;  %2314 = vmatpush3.msra.mxu1 %v2908_v9 }
  0xa2   : > { %2288 = vmatprep.subr.mxu0 %v3031_v58  ;;  %2315 = vmatprep.subr.mxu1 %v2910_v10 }
  0xa3   : > { %2289 = vmatpush3.msra.mxu0 %v3031_v58  ;;  %2316 = vmatpush3.msra.mxu1 %v2910_v10 }
  0xa4   : > { %2290 = vmatprep.subr.mxu0 %v3051_v1  ;;  %2317 = vmatprep.subr.mxu1 %v2912_v11 }
  0xa5   : > { %2291 = vmatpush3.msra.mxu0 %v3051_v1  ;;  %2318 = vmatpush3.msra.mxu1 %v2912_v11 }
  0xa6   : > { %2292 = vmatprep.subr.mxu0 %v3067_v13  ;;  %2319 = vmatprep.subr.mxu1 %v2921_v16 }
  0xa7   : > { %2293 = vmatpush3.msra.mxu0 %v3067_v13  ;;  %2320 = vmatpush3.msra.mxu1 %v2921_v16 }
  0xa8   : > { %2294 = vmatprep.subr.mxu0 %v3091_v40  ;;  %2321 = vmatprep.subr.mxu1 %v2943_v24 }
  0xa9   : > { %2295 = vmatpush3.msra.mxu0 %v3091_v40  ;;  %2322 = vmatpush3.msra.mxu1 %v2943_v24 }
  0xaa   : > { %2296 = vmatprep.subr.mxu0 %v3108_v49  ;;  %2323 = vmatprep.subr.mxu1 %v2949_v27 }
  0xab   : > { %2297 = vmatpush3.msra.mxu0 %v3108_v49  ;;  %2324 = vmatpush3.msra.mxu1 %v2949_v27 }
  0xac   : > { %2298 = vmatprep.subr.mxu0 %v3125_v7  ;;  %2325 = vmatprep.subr.mxu1 %v2968_v34 }
  0xad   : > { %2299 = vmatpush3.msra.mxu0 %v3125_v7  ;;  %2326 = vmatpush3.msra.mxu1 %v2968_v34 }
  0xae   : > { %2300 = vmatprep.subr.mxu0 %v3145_v50  ;;  %2327 = vmatprep.subr.mxu1 %v2993_v45 }
  0xaf   : > { %2301 = vmatpush3.msra.mxu0 %v3145_v50  ;;  %2328 = vmatpush3.msra.mxu1 %v2993_v45 }
  0xb0   : > { %2302 = vmatprep.subr.mxu0 %v3156_v51  ;;  %2329 = vmatprep.subr.mxu1 %v3000_v47 }
  0xb1   : > { %2303 = vmatpush3.msra.mxu0 %v3156_v51  ;;  %2304 = vmatprep.mubr.f32.mxu0 %v3037_v61 }
  0xb2   : > { %2330 = vmatpush3.msra.mxu1 %v3000_v47  ;;  %2305 = vmatmul.mubr.f32.vlgmr.msra.gmra.mxu0 %v3042_v62 }
  0xb3   : > { %2331 = vmatprep.subr.mxu1 %v3028_v57  ;;  %2339 = vmatprep.mubr.f32.mxu1 %v3037_v61  ;;  %v3716_v61 = vld [vmem:[#allocation17_spill] sm:$0xff] }
  0xb4   : > { %2332 = vmatpush3.msra.mxu1 %v3028_v57  ;;  %2342 = vmatprep.subr.mxu0 %v2902_v3 }
  0xb5   : > { %2333 = vmatprep.subr.mxu1 %v3060_v8  ;;  %2343 = vmatpush3.msra.mxu0 %v2902_v3 }
  0xb6   : > { %2334 = vmatpush3.msra.mxu1 %v3060_v8  ;;  %2344 = vmatprep.subr.mxu0 %v2904_v4 }
  0xb7   : > { %2335 = vmatprep.subr.mxu1 %v3078_v31  ;;  %2345 = vmatpush3.msra.mxu0 %v2904_v4 }
  0xb8   : > { %2336 = vmatpush3.msra.mxu1 %v3078_v31  ;;  %2346 = vmatprep.subr.mxu0 %v2906_v5 }
  0xb9   : > { %2337 = vmatprep.subr.mxu1 %v3095_v41  ;;  %2347 = vmatpush3.msra.mxu0 %v2906_v5 }
  0xba   : > { %2338 = vmatpush3.msra.mxu1 %v3095_v41  ;;  %2348 = vmatprep.subr.mxu0 %v2908_v9 }
  0xbb   : > { %2340 = vmatmul.mubr.f32.vlgmr.msra.gmra.mxu1 %v3042_v62  ;;  %2377 = vmatprep.subr.mxu1 %v2971_v36  ;;  %v3718_v62 = vld [vmem:[#allocation22_spill] sm:$0xff] }
  0xbc   : > { %2378 = vmatpush3.msra.mxu1 %v2971_v36  ;;  %2349 = vmatpush3.msra.mxu0 %v2908_v9  ;;  %v3719_v36 = vld [vmem:[#allocation25_spill] sm:$0xff] }
  0xbd   : > { %2379 = vmatprep.subr.mxu1 %v3716_v61  ;;  %2350 = vmatprep.subr.mxu0 %v2910_v10 }
  0xbe   : > { %2380 = vmatpush3.msra.mxu1 %v3716_v61  ;;  %2351 = vmatpush3.msra.mxu0 %v2910_v10 }
  0xbf   : > { %2381 = vmatprep.subr.mxu1 %v3717_v25  ;;  %2352 = vmatprep.subr.mxu0 %v2912_v11 }
  0xc0   : > { %2382 = vmatpush3.msra.mxu1 %v3717_v25  ;;  %2353 = vmatpush3.msra.mxu0 %v2912_v11 }
  0xc1   : > { %2383 = vmatprep.subr.mxu1 %v3718_v62  ;;  %2354 = vmatprep.subr.mxu0 %v2921_v16 }
  0xc2   : > { %2384 = vmatpush3.msra.mxu1 %v3718_v62  ;;  %2355 = vmatpush3.msra.mxu0 %v2921_v16 }
  0xc3   : > { %2385 = vmatprep.subr.mxu1 %v3719_v36  ;;  %2356 = vmatprep.subr.mxu0 %v2943_v24 }
  0xc4   : > { %2386 = vmatpush3.msra.mxu1 %v3719_v36  ;;  %2357 = vmatpush3.msra.mxu0 %v2943_v24 }
  0xc5   : > { %2387 = vmatprep.subr.mxu1 %v3720_v32  ;;  %2358 = vmatprep.subr.mxu0 %v2949_v27 }
  0xc6   : > { %2388 = vmatpush3.msra.mxu1 %v3720_v32  ;;  %2359 = vmatpush3.msra.mxu0 %v2949_v27 }
  0xc7   : > { %2389 = vmatprep.subr.mxu1 %v3721_v18  ;;  %2360 = vmatprep.subr.mxu0 %v2968_v34 }
  0xc8   : > { %2390 = vmatpush3.msra.mxu1 %v3721_v18  ;;  %2361 = vmatpush3.msra.mxu0 %v2968_v34 }
  0xc9   : > { %2391 = vmatprep.subr.mxu1 %v3722_v0  ;;  %2362 = vmatprep.subr.mxu0 %v2993_v45 }
  0xca   : > { %2392 = vmatpush3.msra.mxu1 %v3722_v0  ;;  %2363 = vmatpush3.msra.mxu0 %v2993_v45 }
  0xcb   : > { %2393 = vmatprep.subr.mxu1 %v3723_v55  ;;  %2364 = vmatprep.subr.mxu0 %v3000_v47 }
  0xcc   : > { %2394 = vmatpush3.msra.mxu1 %v3723_v55  ;;  %2365 = vmatpush3.msra.mxu0 %v3000_v47 }
  0xcd   : > { %2395 = vmatprep.subr.mxu1 %v3724_v12  ;;  %2366 = vmatprep.subr.mxu0 %v3028_v57 }
  0xce   : > { %2396 = vmatpush3.msra.mxu1 %v3724_v12  ;;  %2367 = vmatpush3.msra.mxu0 %v3028_v57 }
  0xcf   : > { %2397 = vmatprep.subr.mxu1 %v3132_v2  ;;  %2368 = vmatprep.subr.mxu0 %v3060_v8 }
  0xd0   : > { %2398 = vmatpush3.msra.mxu1 %v3132_v2  ;;  %2369 = vmatpush3.msra.mxu0 %v3060_v8 }
  0xd1   : > { %2399 = vmatprep.subr.mxu1 %v3149_v56  ;;  %2370 = vmatprep.subr.mxu0 %v3078_v31 }
  0xd2   : > { %2400 = vmatpush3.msra.mxu1 %v3149_v56  ;;  %2371 = vmatpush3.msra.mxu0 %v3078_v31 }
  0xd3   : > { %2401 = vmatprep.subr.mxu1 %v3160_v44  ;;  %2372 = vmatprep.subr.mxu0 %v3095_v41 }
  0xd4   : > { %2402 = vmatpush3.msra.mxu1 %v3160_v44  ;;  %2373 = vmatpush3.msra.mxu0 %v3095_v41 }
  0xd5   : > { %2403 = vmatprep.subr.mxu1 %v3170_v37  ;;  %2412 = vmatprep.subr.mxu0 %v2916_v14 }
  0xd6   : > { %2404 = vmatpush3.msra.mxu1 %v3170_v37 }
  0xd7   : > { %2405 = vmatprep.subr.mxu1 %v3176_v63 }
  0xd8   : > { %2406 = vmatpush3.msra.mxu1 %v3176_v63 }
  0xd9   : > { %2407 = vmatprep.subr.mxu1 %v3182_v35 }
  0xda   : > { %2408 = vmatpush3.msra.mxu1 %v3182_v35 }
  0xdb   : > { %2447 = vmatprep.subr.mxu1 %v2902_v3 }
 0x12f   : > { %v2166_v2 = vpop.f32.mrf.mxu0 }
 0x131   : > { %v282_v44 = vpop.f32.mrf.mxu0 }
 0x137   : > { %v2201_v56 = vpop.f32.mrf.mxu1 }
 0x138   : > { %v450_v36 = vadd.f32 %v2201_v56, %v2166_v2 }
 0x139   : > { %v443_v61 = vpop.f32.mrf.mxu1 }
 0x13a   : > { %v444_v37 = vadd.f32 %v443_v61, %v282_v44 }
 0x150   : > { %v2236_v38 = vpop.f32.mrf.mxu0 }
 0x151   : > { %v561_v18 = vadd.f32 %v2236_v38, %v450_v36 }
 0x152   : > { %v553_v25 = vpop.f32.mrf.mxu0 }
 0x153   : > { %v554_v55 = vadd.f32 %v553_v25, %v444_v37 }
 0x159   : > { %v2271_v62 = vpop.f32.mrf.mxu1 }
 0x15a   : > { %v658_v63 = vadd.f32 %v2271_v62, %v561_v18 }
 0x15b   : > { %v649_v0 = vpop.f32.mrf.mxu1 }
 0x15c   : > { %v650_v51 = vadd.f32 %v649_v0, %v554_v55 }
 0x172   : > { %v2306_v32 = vpop.f32.mrf.mxu0 }
 0x173   : > { %v783_v50 = vadd.f32 %v2306_v32, %v658_v63 }
 0x174   : > { %v776_v12 = vpop.f32.mrf.mxu0 }
 0x175   : > { %v777_v7 = vadd.f32 %v776_v12, %v650_v51 }
 0x17b   : > { %v2341_v35 = vpop.f32.mrf.mxu1 }
 0x17c   : > { %v876_v49 = vadd.f32 %v2341_v35, %v783_v50 }
 0x17d   : > { %v869_v40 = vpop.f32.mrf.mxu1 }
 0x17e   : > { %882 = vst [vmem:[#allocation2 + $0xc] sm:$0xff] %v876_v49  ;;  %v870_v13 = vadd.f32 %v869_v40, %v777_v7  ;;  %v932_v35 = vmul.f32 0.23638351, %v876_v49 }
 0x180   : > { %881 = vst [vmem:[#allocation2 + $0x4] sm:$0xff] %v870_v13 }
 0x185   : > { %v885_v1 = vld [vmem:[#allocation2 + $0x12] sm:$0x1]  ;;  %v889_v58 = vld [vmem:[#allocation2 + $0x11] sm:$0x1]  ;;  %v893_v52 = vld [vmem:[#allocation2 + $0x10] sm:$0x1] }
 0x186   : > { %886 = vst [vmem:[#allocation2 + $0x14] sm:$0x1] %v885_v1  ;;  %890 = vst [vmem:[#allocation2 + $0x15] sm:$0x1] %v889_v58  ;;  %v897_v2 = vld [vmem:[#allocation2 + $0xf] sm:$0x1] }
 0x187   : > { %894 = vst [vmem:[#allocation2 + $0x16] sm:$0x1] %v893_v52  ;;  %898 = vst [vmem:[#allocation2 + $0x17] sm:$0x1] %v897_v2  ;;  %v883_v44 = vld [vmem:[#allocation2 + $0x5] sm:$0x1] }
 0x188   : > { %v887_v56 = vld [vmem:[#allocation2 + $0x6] sm:$0x1]  ;;  %v891_v38 = vld [vmem:[#allocation2 + $0x7] sm:$0x1]  ;;  %884 = vst [vmem:[#allocation2 + $0x3] sm:$0x1] %v883_v44 }
 0x189   : > { %888 = vst [vmem:[#allocation2 + $0x2] sm:$0x1] %v887_v56  ;;  %892 = vst [vmem:[#allocation2 + $0x1] sm:$0x1] %v891_v38  ;;  %v895_v51 = vld [vmem:[#allocation2 + $0x8] sm:$0x1] }
 0x18a   : > { %896 = vst [vmem:[#allocation2] sm:$0x1] %v895_v51  ;;  %v961_v50 = vld [vmem:[#allocation2 + $0x8] sm:$0xff] }
 0x18b   : > { %v963_v61 = vmul.f32 0.014839454, %v961_v50  ;;  %v908_v7 = vld [vmem:[#allocation2 + $0x9] sm:$0xff] }
 0x18c   : > { %v916_v40 = vld [vmem:[#allocation2 + $0xa] sm:$0xff]  ;;  %v910_v25 = vmul.f32 0.04981729, %v908_v7 }
 0x18d   : > { %v924_v62 = vld [vmem:[#allocation2 + $0xb] sm:$0xff]  ;;  %v918_v1 = vmul.f32 0.11832251, %v916_v40 }
 0x18e   : > { %v912_v36 = vadd.f32 %v963_v61, %v910_v25  ;;  %v926_v32 = vmul.f32 0.198829, %v924_v62  ;;  %v938_v55 = vld [vmem:[#allocation2 + $0xd] sm:$0xff] }
 0x18f   : > { %v923_v2 = vld [vmem:[#allocation2 + $0x3] sm:$0xff]  ;;  %v946_v44 = vld [vmem:[#allocation2 + $0xe] sm:$0xff]  ;;  %v940_v50 = vmul.f32 0.198829, %v938_v55 }
 0x190   : > { %v907_v58 = vld [vmem:[#allocation2 + $0x1] sm:$0xff]  ;;  %v920_v52 = vadd.f32 %v918_v1, %v912_v36  ;;  %v954_v7 = vld [vmem:[#allocation2 + $0xf] sm:$0xff]  ;;  %v925_v25 = vmul.f32 0.198829, %v923_v2  ;;  %v948_v39 = vmul.f32 0.11832251, %v946_v44 }
 0x191   : > { %v901_v37 = vld [vmem:[#allocation2] sm:$0xff]  ;;  %v909_v18 = vmul.f32 0.04981729, %v907_v58  ;;  %v962_v62 = vld [vmem:[#allocation2 + $0x10] sm:$0xff]  ;;  %v931_v58 = vmul.f32 0.23638351, %v870_v13 }
 0x192   : > { %v915_v0 = vld [vmem:[#allocation2 + $0x2] sm:$0xff]  ;;  %v903_v63 = vmul.f32 0.014839454, %v901_v37  ;;  %v928_v12 = vadd.f32 %v926_v32, %v920_v52  ;;  %v956_v26 = vmul.f32 0.04981729, %v954_v7 }
 0x193   : > { %v917_v38 = vmul.f32 0.11832251, %v915_v0  ;;  %v937_v36 = vld [vmem:[#allocation2 + $0x5] sm:$0xff]  ;;  %v964_v23 = vmul.f32 0.014839454, %v962_v62 }
 0x194   : > { %v911_v56 = vadd.f32 %v909_v18, %v903_v63  ;;  %v934_v51 = vadd.f32 %v932_v35, %v928_v12  ;;  %v945_v37 = vld [vmem:[#allocation2 + $0x6] sm:$0xff]  ;;  %v939_v49 = vmul.f32 0.198829, %v937_v36 }
 0x195   : > { %v953_v18 = vld [vmem:[#allocation2 + $0x7] sm:$0xff]  ;;  %v947_v63 = vmul.f32 0.11832251, %v945_v37 }
 0x196   : > { %v919_v42 = vadd.f32 %v917_v38, %v911_v56  ;;  %v942_v40 = vadd.f32 %v940_v50, %v934_v51  ;;  %v955_v35 = vmul.f32 0.04981729, %v953_v18  ;;  %v3725_v2 = vld [vmem:[#allocation24_spill] sm:$0xff]  ;;  %v2745_v38 = vmov 0.0  }
 0x198   : > { %v927_v1 = vadd.f32 %v925_v25, %v919_v42  ;;  %v950_v28 = vadd.f32 %v948_v39, %v942_v40  ;;  %v2746_v25 = vmov 1.0  }
 0x19a   : > { %v933_v52 = vadd.f32 %v931_v58, %v927_v1  ;;  %v958_v32 = vadd.f32 %v956_v26, %v950_v28  ;;  %v3728_v28 = vld [vmem:[#allocation21_spill] sm:$0xff] }
 0x19c   : > { %v941_v0 = vadd.f32 %v939_v49, %v933_v52  ;;  %v966_v55 = vadd.f32 %v964_v23, %v958_v32 }
 0x19e   : > { %v949_v12 = vadd.f32 %v947_v63, %v941_v0  ;;  %v3393_v56 = vsub.f32 %v3725_v2, %v966_v55 }
 0x1a0   : > { %v957_v44 = vadd.f32 %v955_v35, %v949_v12  ;;  %v970_v42 = vand.u32 2147483647, %v3393_v56  ;;  %v978_v55 = vmul.f32 0.5, %v3393_v56 }
 0x1a2   : > { %v965_v13 = vadd.f32 %v963_v61, %v957_v44  ;;  %vm3396_vm0 = vcmp.gt.f32.partialorder %v970_v42, 0.039215688 }
 0x1a3   : > { %v1902_v26 = vsel %vm3396_vm0, 1.0, %v2745_v38 }
 0x1a4   : > { %v3403_v51 = vsub.f32 %v3728_v28, %v965_v13  ;;  %v3405_v23 = vsub.f32 %v1902_v26, %v1902_v26 }
 0x1a6   : > { %v969_v50 = vand.u32 2147483647, %v3403_v51  ;;  %v1098_v40 = vand.u32 4294901760, %v3405_v23 }
 0x1a8   : > { %vm3408_vm1 = vcmp.gt.f32.partialorder %v969_v50, 0.039215688  ;;  %v1099_v1 = vsub.f32 %v3405_v23, %v1098_v40 }
 0x1a9   : > { %v1901_v61 = vsel %vm3408_vm1, 1.0, %v2745_v38  ;;  %2409 = vmatprep.mubr.msk.f32.mxu1 %vm3408_vm1, %v2746_v25 }
 0x1aa   : > { %v1087_v36 = vsub.f32 %v1901_v61, %v1901_v61  ;;  %2410 = vmatmul.mubr.msk.f32.vlgmr.msra.gmra.mxu1 %vm3396_vm0, %v2746_v25  ;;  %v1100_v52 = vand.u32 4294901760, %v1099_v1 }
 0x1ab   : > { %2448 = vmatpush3.msra.mxu1 %v2902_v3 }
 0x1ac   : > { %2449 = vmatprep.subr.mxu1 %v2904_v4  ;;  %v1088_v62 = vand.u32 4294901760, %v1087_v36 }
 0x1ad   : > { %2450 = vmatpush3.msra.mxu1 %v2904_v4 }
 0x1ae   : > { %2451 = vmatprep.subr.mxu1 %v2906_v5  ;;  %2479 = vmatprep.mubr.f32.mxu1 %v1088_v62  ;;  %v1089_v58 = vsub.f32 %v1087_v36, %v1088_v62 }
 0x1af   : > { %2452 = vmatpush3.msra.mxu1 %v2906_v5 }
 0x1b0   : > { %2453 = vmatprep.subr.mxu1 %v2908_v9  ;;  %v1090_v37 = vand.u32 4294901760, %v1089_v58 }
 0x1b1   : > { %2454 = vmatpush3.msra.mxu1 %v2908_v9 }
 0x1b2   : > { %2455 = vmatprep.subr.mxu1 %v2910_v10  ;;  %2374 = vmatprep.mubr.f32.mxu0 %v1090_v37 }
 0x1b3   : > { %2456 = vmatpush3.msra.mxu1 %v2910_v10  ;;  %2375 = vmatmul.mubr.f32.vlgmr.msra.gmra.mxu0 %v1100_v52  ;;  %v977_v52 = vmul.f32 0.5, %v3403_v51 }
 0x1b4   : > { %2413 = vmatpush3.msra.mxu0 %v2916_v14  ;;  %2457 = vmatprep.subr.mxu1 %v2912_v11  ;;  %v3737_v14 = vld [vmem:[#allocation26_spill] sm:$0xff] }
 0x1b5   : > { %2414 = vmatprep.subr.mxu0 %v2919_v15  ;;  %2444 = vmatprep.mubr.f32.mxu0 %v1087_v36 }
 0x1b6   : > { %2458 = vmatpush3.msra.mxu1 %v2912_v11  ;;  %2415 = vmatpush3.msra.mxu0 %v2919_v15  ;;  %v3738_v15 = vld [vmem:[#allocation28_spill] sm:$0xff] }
 0x1b7   : > { %2459 = vmatprep.subr.mxu1 %v2921_v16  ;;  %2416 = vmatprep.subr.mxu0 %v2924_v17 }
 0x1b8   : > { %2460 = vmatpush3.msra.mxu1 %v2921_v16  ;;  %2417 = vmatpush3.msra.mxu0 %v2924_v17  ;;  %v3740_v17 = vld [vmem:[#allocation32_spill] sm:$0xff] }
 0x1b9   : > { %2461 = vmatprep.subr.mxu1 %v2943_v24  ;;  %2418 = vmatprep.subr.mxu0 %v2928_v19 }
 0x1ba   : > { %2462 = vmatpush3.msra.mxu1 %v2943_v24  ;;  %2419 = vmatpush3.msra.mxu0 %v2928_v19  ;;  %v3741_v19 = vld [vmem:[#allocation34_spill] sm:$0xff] }
 0x1bb   : > { %2463 = vmatprep.subr.mxu1 %v2949_v27  ;;  %2420 = vmatprep.subr.mxu0 %v2931_v20 }
 0x1bc   : > { %2464 = vmatpush3.msra.mxu1 %v2949_v27  ;;  %2421 = vmatpush3.msra.mxu0 %v2931_v20  ;;  %v3742_v20 = vld [vmem:[#allocation36_spill] sm:$0xff] }
 0x1bd   : > { %2465 = vmatprep.subr.mxu1 %v2968_v34  ;;  %2422 = vmatprep.subr.mxu0 %v2955_v29 }
 0x1be   : > { %2466 = vmatpush3.msra.mxu1 %v2968_v34  ;;  %2423 = vmatpush3.msra.mxu0 %v2955_v29 }
 0x1bf   : > { %2467 = vmatprep.subr.mxu1 %v2993_v45  ;;  %2424 = vmatprep.subr.mxu0 %v2965_v33 }
 0x1c0   : > { %2468 = vmatpush3.msra.mxu1 %v2993_v45  ;;  %2425 = vmatpush3.msra.mxu0 %v2965_v33 }
 0x1c1   : > { %2469 = vmatprep.subr.mxu1 %v3000_v47  ;;  %2426 = vmatprep.subr.mxu0 %v2987_v43 }
 0x1c2   : > { %2470 = vmatpush3.msra.mxu1 %v3000_v47  ;;  %2427 = vmatpush3.msra.mxu0 %v2987_v43 }
 0x1c3   : > { %2471 = vmatprep.subr.mxu1 %v3028_v57  ;;  %2428 = vmatprep.subr.mxu0 %v2996_v46 }
 0x1c4   : > { %2472 = vmatpush3.msra.mxu1 %v3028_v57  ;;  %2429 = vmatpush3.msra.mxu0 %v2996_v46 }
 0x1c5   : > { %2473 = vmatprep.subr.mxu1 %v3060_v8  ;;  %2430 = vmatprep.subr.mxu0 %v3015_v53 }
 0x1c6   : > { %2474 = vmatpush3.msra.mxu1 %v3060_v8  ;;  %2431 = vmatpush3.msra.mxu0 %v3015_v53 }
 0x1c7   : > { %2475 = vmatprep.subr.mxu1 %v3078_v31  ;;  %2432 = vmatprep.subr.mxu0 %v3034_v60 }
 0x1c8   : > { %2476 = vmatpush3.msra.mxu1 %v3078_v31  ;;  %2433 = vmatpush3.msra.mxu0 %v3034_v60 }
 0x1c9   : > { %2477 = vmatprep.subr.mxu1 %v3095_v41  ;;  %2434 = vmatprep.subr.mxu0 %v3054_v6 }
 0x1ca   : > { %2478 = vmatpush3.msra.mxu1 %v3095_v41  ;;  %2435 = vmatpush3.msra.mxu0 %v3054_v6 }
 0x1cb   : > { %2480 = vmatmul.mubr.f32.vlgmr.msra.gmra.mxu1 %v1098_v40  ;;  %2517 = vmatprep.subr.mxu1 %v2902_v3 }
 0x1cc   : > { %2436 = vmatprep.subr.mxu0 %v3074_v30  ;;  %2518 = vmatpush3.msra.mxu1 %v2902_v3  ;;  %v3731_v3 = vld [vmem:[#allocation14_spill] sm:$0xff] }
 0x1cd   : > { %2549 = vmatprep.mubr.msk.f32.mxu1 %vm3408_vm1, %v2746_v25  ;;  %2437 = vmatpush3.msra.mxu0 %v3074_v30 }
 0x1ce   : > { %2519 = vmatprep.subr.mxu1 %v2904_v4  ;;  %2438 = vmatprep.subr.mxu0 %v3098_v48 }
 0x1cf   : > { %2520 = vmatpush3.msra.mxu1 %v2904_v4  ;;  %2439 = vmatpush3.msra.mxu0 %v3098_v48  ;;  %v3732_v4 = vld [vmem:[#allocation15_spill] sm:$0xff] }
 0x1d0   : > { %2521 = vmatprep.subr.mxu1 %v2906_v5  ;;  %2440 = vmatprep.subr.mxu0 %v3114_v54 }
 0x1d1   : > { %2522 = vmatpush3.msra.mxu1 %v2906_v5  ;;  %2441 = vmatpush3.msra.mxu0 %v3114_v54  ;;  %v3733_v5 = vld [vmem:[#allocation16_spill] sm:$0xff] }
 0x1d2   : > { %2523 = vmatprep.subr.mxu1 %v2908_v9  ;;  %2442 = vmatprep.subr.mxu0 %v3128_v59 }
 0x1d3   : > { %2524 = vmatpush3.msra.mxu1 %v2908_v9  ;;  %2443 = vmatpush3.msra.mxu0 %v3128_v59  ;;  %v3734_v9 = vld [vmem:[#allocation18_spill] sm:$0xff] }
 0x1d4   : > { %2525 = vmatprep.subr.mxu1 %v2910_v10  ;;  %2445 = vmatmul.mubr.f32.vlgmr.msra.gmra.mxu0 %v3405_v23  ;;  %v2615_v23 = vld [vmem:[%s2892_s19 + $0x8] sm:$0xff] }
 0x1d5   : > { %2482 = vmatprep.subr.mxu0 %v2935_v21  ;;  %2526 = vmatpush3.msra.mxu1 %v2910_v10  ;;  %v3735_v10 = vld [vmem:[#allocation19_spill] sm:$0xff]  ;;  %v980_v50 = vadd.f32 %v2615_v23, %v978_v55 }
 0x1d6   : > { %2483 = vmatpush3.msra.mxu0 %v2935_v21  ;;  %2514 = vmatprep.mubr.msk.f32.mxu0 %vm3408_vm1, %v2746_v25  ;;  %v3743_v21 = vld [vmem:[#allocation37_spill] sm:$0xff] }
 0x1d7   : > { %2527 = vmatprep.subr.mxu1 %v2912_v11  ;;  %2484 = vmatprep.subr.mxu0 %v2938_v22  ;;  %v982_v62 = vmax.f32 %v980_v50, 0.0 }
 0x1d8   : > { %2528 = vmatpush3.msra.mxu1 %v2912_v11  ;;  %2485 = vmatpush3.msra.mxu0 %v2938_v22  ;;  %v3736_v11 = vld [vmem:[#allocation23_spill] sm:$0xff]  ;;  %v3744_v22 = vld [vmem:[#allocation38_spill] sm:$0xff] }
 0x1d9   : > { %2529 = vmatprep.subr.mxu1 %v2921_v16  ;;  %2486 = vmatprep.subr.mxu0 %v3731_v3 }
 0x1da   : > { %2530 = vmatpush3.msra.mxu1 %v2921_v16  ;;  %2487 = vmatpush3.msra.mxu0 %v3731_v3  ;;  %v3739_v16 = vld [vmem:[#allocation30_spill] sm:$0xff] }
 0x1db   : > { %2531 = vmatprep.subr.mxu1 %v2943_v24  ;;  %2488 = vmatprep.subr.mxu0 %v3732_v4 }
 0x1dc   : > { %2532 = vmatpush3.msra.mxu1 %v2943_v24  ;;  %2489 = vmatpush3.msra.mxu0 %v3732_v4 }
 0x1dd   : > { %2533 = vmatprep.subr.mxu1 %v2949_v27  ;;  %2490 = vmatprep.subr.mxu0 %v3733_v5 }
 0x1de   : > { %2534 = vmatpush3.msra.mxu1 %v2949_v27  ;;  %2491 = vmatpush3.msra.mxu0 %v3733_v5 }
 0x1df   : > { %2535 = vmatprep.subr.mxu1 %v2968_v34  ;;  %2492 = vmatprep.subr.mxu0 %v3734_v9 }
 0x1e0   : > { %2536 = vmatpush3.msra.mxu1 %v2968_v34  ;;  %2493 = vmatpush3.msra.mxu0 %v3734_v9 }
 0x1e1   : > { %2537 = vmatprep.subr.mxu1 %v2993_v45  ;;  %2494 = vmatprep.subr.mxu0 %v3735_v10 }
 0x1e2   : > { %2538 = vmatpush3.msra.mxu1 %v2993_v45  ;;  %2495 = vmatpush3.msra.mxu0 %v3735_v10 }
 0x1e3   : > { %2539 = vmatprep.subr.mxu1 %v3000_v47  ;;  %2496 = vmatprep.subr.mxu0 %v3736_v11 }
 0x1e4   : > { %2540 = vmatpush3.msra.mxu1 %v3000_v47  ;;  %2497 = vmatpush3.msra.mxu0 %v3736_v11 }
 0x1e5   : > { %2541 = vmatprep.subr.mxu1 %v3028_v57  ;;  %2498 = vmatprep.subr.mxu0 %v3737_v14 }
 0x1e6   : > { %2542 = vmatpush3.msra.mxu1 %v3028_v57  ;;  %2499 = vmatpush3.msra.mxu0 %v3737_v14 }
 0x1e7   : > { %2543 = vmatprep.subr.mxu1 %v3060_v8  ;;  %2500 = vmatprep.subr.mxu0 %v3738_v15 }
 0x1e8   : > { %2544 = vmatpush3.msra.mxu1 %v3060_v8  ;;  %2501 = vmatpush3.msra.mxu0 %v3738_v15 }
 0x1e9   : > { %2545 = vmatprep.subr.mxu1 %v3078_v31  ;;  %2502 = vmatprep.subr.mxu0 %v3739_v16 }
 0x1ea   : > { %2546 = vmatpush3.msra.mxu1 %v3078_v31  ;;  %2503 = vmatpush3.msra.mxu0 %v3739_v16 }
 0x1eb   : > { %2547 = vmatprep.subr.mxu1 %v3095_v41  ;;  %2504 = vmatprep.subr.mxu0 %v3740_v17 }
 0x1ec   : > { %2548 = vmatpush3.msra.mxu1 %v3095_v41  ;;  %2505 = vmatpush3.msra.mxu0 %v3740_v17 }
 0x1ed   : > { %2550 = vmatmul.mubr.msk.f32.vlgmr.msra.gmra.mxu1 %vm3396_vm0, %v2746_v25  ;;  %2506 = vmatprep.subr.mxu0 %v3741_v19 }
 0x1ee   : > { %2507 = vmatpush3.msra.mxu0 %v3741_v19 }
 0x1ef   : > { %2508 = vmatprep.subr.mxu0 %v3742_v20 }
 0x1f0   : > { %2509 = vmatpush3.msra.mxu0 %v3742_v20 }
 0x1f1   : > { %2510 = vmatprep.subr.mxu0 %v3743_v21 }
 0x1f2   : > { %2511 = vmatpush3.msra.mxu0 %v3743_v21 }
 0x1f3   : > { %2512 = vmatprep.subr.mxu0 %v3744_v22 }
 0x1f4   : > { %2513 = vmatpush3.msra.mxu0 %v3744_v22  ;;  %v2616_v22 = vld [vmem:[%s2892_s19] sm:$0xff] }
 0x1f5   : > { %2515 = vmatmul.mubr.msk.f32.vlgmr.msra.gmra.mxu0 %vm3396_vm0, %v2746_v25 }
 0x26a   : > { %v2411_v27 = vpop.f32.mrf.mxu1 }
 0x26c   : > { %v1253_v34 = vpop.f32.mrf.mxu1 }
 0x273   : > { %v2376_v24 = vpop.f32.mrf.mxu0 }
 0x274   : > { %v1260_v43 = vadd.f32 %v2411_v27, %v2376_v24  ;;  %v979_v24 = vadd.f32 %v2616_v22, %v977_v52  ;;  %v984_v27 = vmin.f32 %v982_v62, 1.0 }
 0x275   : > { %v1092_v29 = vpop.f32.mrf.mxu0 }
 0x276   : > { %v1254_v47 = vadd.f32 %v1253_v34, %v1092_v29 }
 0x28b   : > { %v2481_v45 = vpop.f32.mrf.mxu1 }
 0x28d   : > { %v1459_v57 = vpop.f32.mrf.mxu1 }
 0x294   : > { %v2446_v33 = vpop.f32.mrf.mxu0 }
 0x295   : > { %v1371_v53 = vadd.f32 %v2446_v33, %v1260_v43 }
 0x296   : > { %v1363_v46 = vpop.f32.mrf.mxu0 }
 0x297   : > { %v1364_v54 = vadd.f32 %v1363_v46, %v1254_v47  ;;  %v1468_v60 = vadd.f32 %v2481_v45, %v1371_v53 }
 0x299   : > { %v1460_v31 = vadd.f32 %v1459_v57, %v1364_v54  ;;  %v986_v57 = vsub.f32 %v984_v27, %v2615_v23 }
 0x2ad   : > { %v2551_v6 = vpop.f32.mrf.mxu1 }
 0x2af   : > { %v1679_v49 = vpop.f32.mrf.mxu1 }
 0x2b5   : > { %v2516_v8 = vpop.f32.mrf.mxu0 }
 0x2b6   : > { %v1593_v30 = vadd.f32 %v2516_v8, %v1468_v60 }
 0x2b7   : > { %v1586_v41 = vpop.f32.mrf.mxu0 }
 0x2b8   : > { %v1686_v48 = vadd.f32 %v2551_v6, %v1593_v30  ;;  %v1587_v59 = vadd.f32 %v1586_v41, %v1460_v31  ;;  %v981_v6 = vmax.f32 %v979_v24, 0.0 }
 0x2ba   : > { %1691 = vst [vmem:[#allocation3 + $0xc] sm:$0xff] %v1686_v48  ;;  %v1680_v32 = vadd.f32 %v1679_v49, %v1587_v59  ;;  %v1736_v37 = vmul.f32 0.23638351, %v1686_v48  ;;  %v1768_v48 = vld [vmem:[%s2892_s19 + $0x8] sm:$0xff] }
 0x2bc   : > { %1690 = vst [vmem:[#allocation3 + $0x4] sm:$0xff] %v1680_v32  ;;  %v1735_v47 = vmul.f32 0.23638351, %v1680_v32 }
 0x2c1   : > { %v1694_v18 = vld [vmem:[#allocation3 + $0x12] sm:$0x1]  ;;  %v1698_v0 = vld [vmem:[#allocation3 + $0x11] sm:$0x1]  ;;  %v1702_v63 = vld [vmem:[#allocation3 + $0x10] sm:$0x1] }
 0x2c2   : > { %1695 = vst [vmem:[#allocation3 + $0x14] sm:$0x1] %v1694_v18  ;;  %1699 = vst [vmem:[#allocation3 + $0x15] sm:$0x1] %v1698_v0  ;;  %v1706_v12 = vld [vmem:[#allocation3 + $0xf] sm:$0x1] }
 0x2c3   : > { %1703 = vst [vmem:[#allocation3 + $0x16] sm:$0x1] %v1702_v63  ;;  %1707 = vst [vmem:[#allocation3 + $0x17] sm:$0x1] %v1706_v12  ;;  %v1692_v35 = vld [vmem:[#allocation3 + $0x5] sm:$0x1] }
 0x2c4   : > { %v1696_v2 = vld [vmem:[#allocation3 + $0x6] sm:$0x1]  ;;  %v1700_v44 = vld [vmem:[#allocation3 + $0x7] sm:$0x1]  ;;  %1693 = vst [vmem:[#allocation3 + $0x3] sm:$0x1] %v1692_v35 }
 0x2c5   : > { %1697 = vst [vmem:[#allocation3 + $0x2] sm:$0x1] %v1696_v2  ;;  %1701 = vst [vmem:[#allocation3 + $0x1] sm:$0x1] %v1700_v44  ;;  %v1704_v42 = vld [vmem:[#allocation3 + $0x8] sm:$0x1] }
 0x2c6   : > { %v1709_v13 = vld [vmem:[#allocation3 + $0x8] sm:$0xff]  ;;  %1705 = vst [vmem:[#allocation3] sm:$0x1] %v1704_v42  ;;  %v983_v0 = vmin.f32 %v981_v6, 1.0 }
 0x2c7   : > { %v1714_v39 = vld [vmem:[#allocation3 + $0x9] sm:$0xff]  ;;  %v1711_v38 = vmul.f32 0.014839454, %v1709_v13 }
 0x2c8   : > { %v1716_v26 = vmul.f32 0.04981729, %v1714_v39  ;;  %v1721_v28 = vld [vmem:[#allocation3 + $0xa] sm:$0xff]  ;;  %v985_v35 = vsub.f32 %v983_v0, %v2616_v22 }
 0x2c9   : > { %v1728_v56 = vld [vmem:[#allocation3 + $0xb] sm:$0xff]  ;;  %v1723_v7 = vmul.f32 0.11832251, %v1721_v28 }
 0x2ca   : > { %v1718_v61 = vadd.f32 %v1716_v26, %v1711_v38  ;;  %v1730_v40 = vmul.f32 0.198829, %v1728_v56  ;;  %v1741_v36 = vld [vmem:[#allocation3 + $0xd] sm:$0xff]  ;;  %v1740_v45 = vld [vmem:[#allocation3 + $0x5] sm:$0xff] }
 0x2cb   : > { %v1748_v9 = vld [vmem:[#allocation3 + $0xe] sm:$0xff]  ;;  %v1743_v14 = vmul.f32 0.198829, %v1741_v36  ;;  %v1727_v15 = vld [vmem:[#allocation3 + $0x3] sm:$0xff]  ;;  %v1742_v30 = vmul.f32 0.198829, %v1740_v45 }
 0x2cc   : > { %v1725_v25 = vadd.f32 %v1723_v7, %v1718_v61  ;;  %v1713_v1 = vld [vmem:[#allocation3 + $0x1] sm:$0xff]  ;;  %v1755_v16 = vld [vmem:[#allocation3 + $0xf] sm:$0xff]  ;;  %v1750_v21 = vmul.f32 0.11832251, %v1748_v9  ;;  %v1729_v51 = vmul.f32 0.198829, %v1727_v15 }
 0x2cd   : > { %v1708_v3 = vld [vmem:[#allocation3] sm:$0xff]  ;;  %v1715_v4 = vmul.f32 0.04981729, %v1713_v1  ;;  %v1762_v29 = vld [vmem:[#allocation3 + $0x10] sm:$0xff]  ;;  %v1757_v43 = vmul.f32 0.04981729, %v1755_v16 }
 0x2ce   : > { %v1732_v58 = vadd.f32 %v1730_v40, %v1725_v25  ;;  %v1720_v5 = vld [vmem:[#allocation3 + $0x2] sm:$0xff]  ;;  %v1710_v10 = vmul.f32 0.014839454, %v1708_v3  ;;  %v1764_v54 = vmul.f32 0.014839454, %v1762_v29 }
 0x2cf   : > { %v1722_v17 = vmul.f32 0.11832251, %v1720_v5  ;;  %v1747_v60 = vld [vmem:[#allocation3 + $0x6] sm:$0xff] }
 0x2d0   : > { %v1738_v11 = vadd.f32 %v1736_v37, %v1732_v58  ;;  %v1717_v19 = vadd.f32 %v1715_v4, %v1710_v10  ;;  %v1754_v41 = vld [vmem:[#allocation3 + $0x7] sm:$0xff]  ;;  %v1749_v49 = vmul.f32 0.11832251, %v1747_v60 }
 0x2d1   : > { %v1756_v32 = vmul.f32 0.04981729, %v1754_v41  ;;  %v1767_v44 = vld [vmem:[%s2892_s19] sm:$0xff] }
 0x2d2   : > { %v1745_v20 = vadd.f32 %v1743_v14, %v1738_v11  ;;  %v1724_v33 = vadd.f32 %v1722_v17, %v1717_v19 }
 0x2d4   : > { %v1752_v34 = vadd.f32 %v1750_v21, %v1745_v20  ;;  %v1731_v46 = vadd.f32 %v1729_v51, %v1724_v33 }
 0x2d6   : > { %v1759_v53 = vadd.f32 %v1757_v43, %v1752_v34  ;;  %v1737_v8 = vadd.f32 %v1735_v47, %v1731_v46 }
 0x2d8   : > { %v1766_v31 = vadd.f32 %v1764_v54, %v1759_v53  ;;  %v1744_v59 = vadd.f32 %v1742_v30, %v1737_v8 }
 0x2da   : > { %v1772_v18 = vmul.f32 %v1766_v31, %v986_v57  ;;  %v1751_v63 = vadd.f32 %v1749_v49, %v1744_v59 }
 0x2dc   : > { %v1774_v55 = vadd.f32 %v1772_v18, %v1768_v48  ;;  %v1758_v12 = vadd.f32 %v1756_v32, %v1751_v63 }
 0x2de   : > { %1776 = vst [vmem:[%s176_s15 + $0x8] sm:$0xff] %v1774_v55  ;;  %v1765_v2 = vadd.f32 %v1758_v12, %v1711_v38 }
 0x2e0   : > { %v1771_v42 = vmul.f32 %v1765_v2, %v985_v35 }
 0x2e2   : > { %v1773_v13 = vadd.f32 %v1771_v42, %v1767_v44 }
 0x2e4   : > { %1775 = vst [vmem:[%s176_s15] sm:$0xff] %v1773_v13 }
 0x2e5   : > { %2684 = shalt.err (!%p2681_p0)
}
 0x2e6   : > { %s2685_s4 = scalar_lea.hbm %s3577_s18, 256  ;;  %s2689_s6 = scalar_lea.hbm %s3623_s2, 1536 }
 0x2e7   : > { %p2686_p5 = scmp.ne.s32.totalorder %s3577_s18, %s2685_s4  ;;  %p2690_p4 = scmp.lt.s32.totalorder %s3577_s18, %s3623_s2 }
 0x2e8   : > { %p2691_p6 = scmp.lt.s32.totalorder %s2689_s6, %s2685_s4 }
 0x2e9   : > { %p2687_p2 = pnand %p2686_p5, %p3745_p10 }
 0x2ea   : > { %p2692_p8 = por %p2691_p6, %p2690_p4 }
 0x2eb   : > { %p2688_p1 = pneg %p2687_p2 }
 0x2ed   : > { %p2693_p3 = pnand %p2692_p8, %p2688_p1 }
 0x2ef   : > { %2696 = shalt.err (!%p2693_p3)
}
 0x2f0   : > { %s2748_s23 = smov 128   ;;  %s2749_s19 = smov 8  }
 0x2f1   : > { %2558 = dma.vmem_to_hbm [thread:$0]  (%p3745_p10), %s3579_s25, 256, %s3577_s18, %s1778_s20, %s2748_s23, %s2748_s23, %s2749_s19  }
 0x2f2 PF: > { %p2575_p7 = scmp.ge.s32.totalorder %s2739_s12, 2  ;;  %s1806_s15 = sand.u32 1, %s2727_s9  }
 0x2f3   : > { %p3746_p9 = scmp.ne.s32.totalorder %s3677_s16, 0  ;;  %s1807_s17 = scalar_lea.sflag [#allocation7], %s1806_s15 }
 0x2f5   : > { %p2569_p11 = pnand %p2575_p7, %p3746_p9 }
 0x2f7   : > { %p2570_p12 = pneg %p2569_p11 }
 0x2f9   : > { %2722 = dma.done.wait (%p2570_p12), %s1807_s17, 256  }
 0x2fa   : > { %2724 = vsyncadd (%p2570_p12), %s1807_s17, 4294967040  ;;  %p16_p13 = scmp.ge.s32.totalorder %s2818_s21, 8   ;;  %s3747_s9 = smov %s2731_s10 }
 0x2fb   : > { %s3748_s10 = smov %s2735_s11  ;;  %s3749_s11 = smov %s2838_s29 }
 0x2fc   : > { %s3750_s12 = smov %s2818_s21  ;;  %18 = sbr.rel (!%p16_p13) target bundleno = 6 (0x6), region = 93 }
 0x301   :  { %1812 = vsyncpa [#allocation6], 1 }
 0x302   :  { %1814 = vsyncpa [#allocation6 + $0x1], 1 }
 0x303   :  { %1815 = vsyncpa [#allocation9], 1 }
 0x304   :  { %1816 = vsyncpa [#allocation7], 1 }
 0x305   :  { %1818 = vsyncpa [#allocation7 + $0x1], 1 }

</bundles_post_ra>
